<compile_context>
chip_gen: v7x
topology: tpu7x:2x2x1
jax: 0.10.0
libtpu: 0.0.40
codegen_flags: <defaults>
</compile_context>

<pallas_src>
import math
from functools import partial

import jax
import jax.numpy as jnp
from jax import lax
from jax.experimental import pallas as pl
from jax.experimental.pallas import tpu as pltpu

# Keep reference (XLA) matmuls at f32 precision so they match the in-kernel
# f32 MXU matmuls.
jax.config.update("jax_default_matmul_precision", "highest")

# NOTE: the spec's gelu really uses 0.0044715 (NOT the usual 0.044715);
# we reproduce the module verbatim.
_GELU_C = 0.0044715
_SQRT_2_OVER_PI = math.sqrt(2.0 / math.pi)


def _gelu_spec(x):
    return 0.5 * x * (1.0 + jnp.tanh(_SQRT_2_OVER_PI * (x + _GELU_C * x * x * x)))


# ---------------------------------------------------------------------------
# Layer norm kernel (custom: unbiased std like torch.Tensor.std, eps added to std)
# ---------------------------------------------------------------------------
def _layer_norm_kernel(x_ref, gamma_ref, beta_ref, o_ref, *, eps, d_model):
    x = x_ref[0].astype(jnp.float32)                       # (S, D)
    mean = jnp.mean(x, axis=-1, keepdims=True)
    diff = x - mean
    var = jnp.sum(diff * diff, axis=-1, keepdims=True) / (d_model - 1)  # unbiased
    std = jnp.sqrt(var)
    y = diff / (std + eps)
    o_ref[0] = (gamma_ref[0].astype(jnp.float32) * y
                + beta_ref[0].astype(jnp.float32)).astype(o_ref.dtype)


def layer_norm(x, gamma, beta, *, eps=1e-8):
    B, S, D = x.shape
    kernel = partial(_layer_norm_kernel, eps=eps, d_model=D)
    return pl.pallas_call(
        kernel,
        out_shape=jax.ShapeDtypeStruct((B, S, D), x.dtype),
        grid_spec=pltpu.PrefetchScalarGridSpec(
            num_scalar_prefetch=0,
            grid=(B,),
            in_specs=[
                pl.BlockSpec((1, S, D), lambda b: (b, 0, 0)),   # x (per batch)
                pl.BlockSpec((1, S, D), lambda b: (0, 0, 0)),   # gamma (resident)
                pl.BlockSpec((1, S, D), lambda b: (0, 0, 0)),   # beta (resident)
            ],
            out_specs=pl.BlockSpec((1, S, D), lambda b: (b, 0, 0)),
        ),
        compiler_params=pltpu.CompilerParams(dimension_semantics=("parallel",)),
    )(x, gamma, beta)


# ---------------------------------------------------------------------------
# Multi-head self-attention kernel (one batch element per grid step)
# ---------------------------------------------------------------------------
def _mha_kernel(x_ref, wq_ref, bq_ref, wk_ref, bk_ref, wv_ref, bv_ref,
                mask_ref, o_ref, *, n_head, d_k):
    x = x_ref[0]                                            # (S, D), native dtype
    q = jnp.dot(x, wq_ref[...], preferred_element_type=jnp.float32) + bq_ref[...].astype(jnp.float32)
    k = jnp.dot(x, wk_ref[...], preferred_element_type=jnp.float32) + bk_ref[...].astype(jnp.float32)
    v = jnp.dot(x, wv_ref[...], preferred_element_type=jnp.float32) + bv_ref[...].astype(jnp.float32)
    mask = mask_ref[0]                                      # (S, S), 1.0 = padded key
    scale = 1.0 / math.sqrt(d_k)
    heads = []
    for h in range(n_head):                                 # static unroll (n_head is small)
        sl = slice(h * d_k, (h + 1) * d_k)
        qh, kh, vh = q[:, sl], k[:, sl], v[:, sl]
        s = lax.dot_general(qh, kh, (((1,), (1,)), ((), ())),
                            preferred_element_type=jnp.float32) * scale
        s = jnp.where(mask > 0.0, jnp.float32(-1e8), s)     # masked_fill semantics
        s_max = jnp.max(s, axis=-1, keepdims=True)
        e = jnp.exp(s - s_max)
        p = e / jnp.sum(e, axis=-1, keepdims=True)
        heads.append(jnp.dot(p, vh, preferred_element_type=jnp.float32))
    o_ref[0] = jnp.concatenate(heads, axis=-1).astype(o_ref.dtype)


def multi_head_self_attention(x, mask_f, wq, bq, wk, bk, wv, bv, *, n_head):
    B, S, D = x.shape
    d_k = D // n_head
    kernel = partial(_mha_kernel, n_head=n_head, d_k=d_k)
    return pl.pallas_call(
        kernel,
        out_shape=jax.ShapeDtypeStruct((B, S, D), x.dtype),
        grid_spec=pltpu.PrefetchScalarGridSpec(
            num_scalar_prefetch=0,
            grid=(B,),
            in_specs=[
                pl.BlockSpec((1, S, D), lambda b: (b, 0, 0)),   # x
                pl.BlockSpec((D, D), lambda b: (0, 0)),         # Wq (resident)
                pl.BlockSpec((1, D), lambda b: (0, 0)),         # bq
                pl.BlockSpec((D, D), lambda b: (0, 0)),         # Wk
                pl.BlockSpec((1, D), lambda b: (0, 0)),         # bk
                pl.BlockSpec((D, D), lambda b: (0, 0)),         # Wv
                pl.BlockSpec((1, D), lambda b: (0, 0)),         # bv
                pl.BlockSpec((1, S, S), lambda b: (b, 0, 0)),   # padding mask
            ],
            out_specs=pl.BlockSpec((1, S, D), lambda b: (b, 0, 0)),
        ),
        compiler_params=pltpu.CompilerParams(dimension_semantics=("parallel",)),
    )(x, wq, bq.reshape(1, D), wk, bk.reshape(1, D), wv, bv.reshape(1, D), mask_f)


# ---------------------------------------------------------------------------
# Feed-forward network kernel (Linear -> gelu -> [dropout: identity] -> Linear)
# ---------------------------------------------------------------------------
def _ffn_kernel(x_ref, w1_ref, b1_ref, w2_ref, b2_ref, o_ref):
    # Feed the MXU activations in their native dtype (no forced f32 upcast);
    # accumulate in f32, cast gelu output back to the native dtype for dot #2.
    x = x_ref[...]
    h = jnp.dot(x, w1_ref[...], preferred_element_type=jnp.float32) + b1_ref[...].astype(jnp.float32)
    g = _gelu_spec(h).astype(x_ref.dtype)
    out = jnp.dot(g, w2_ref[...], preferred_element_type=jnp.float32) + b2_ref[...].astype(jnp.float32)
    # TODO(synk): training-mode dropout would go here (identity at eval).
    o_ref[...] = out.astype(o_ref.dtype)


def _pick_tile_rows(rows, target=512):
    # Real row tiling: prefer a multiple-of-8 tile <= target that divides `rows`
    # and yields >= 2 grid steps so BlockSpec double-buffering can pipeline the
    # x-tile DMA / output writeback against MXU compute.
    for t in (target, 256, 128, 64, 32, 16, 8):
        if t <= rows and rows % t == 0 and rows // t >= 2:
            return t
    return rows


def feed_forward_network(x, w1, b1, w2, b2, *, tile_rows=None):
    """x: (batch, seq, d_model); w1: (d_model, d_ff); w2: (d_ff, d_model)."""
    B, S, D = x.shape
    d_ff = w1.shape[1]
    rows = B * S
    if tile_rows is None:
        tile_rows = _pick_tile_rows(rows)
    assert rows % tile_rows == 0

    x2d = x.reshape(rows, D)
    b1_2d = b1.reshape(1, d_ff)
    b2_2d = b2.reshape(1, D)

    flops = 2 * rows * D * d_ff * 2
    bytes_accessed = (2 * rows * D) * x2d.dtype.itemsize + \
        (w1.size + w2.size + b1.size + b2.size) * w1.dtype.itemsize

    out2d = pl.pallas_call(
        _ffn_kernel,
        out_shape=jax.ShapeDtypeStruct((rows, D), x.dtype),
        grid_spec=pltpu.PrefetchScalarGridSpec(
            num_scalar_prefetch=0,
            grid=(rows // tile_rows,),
            in_specs=[
                pl.BlockSpec((tile_rows, D), lambda i: (i, 0)),  # x tile (pipelined)
                pl.BlockSpec((D, d_ff), lambda i: (0, 0)),       # w1 (resident)
                pl.BlockSpec((1, d_ff), lambda i: (0, 0)),       # b1
                pl.BlockSpec((d_ff, D), lambda i: (0, 0)),       # w2 (resident)
                pl.BlockSpec((1, D), lambda i: (0, 0)),          # b2
            ],
            out_specs=pl.BlockSpec((tile_rows, D), lambda i: (i, 0)),
        ),
        compiler_params=pltpu.CompilerParams(
            dimension_semantics=("parallel",),
            vmem_limit_bytes=64 * 1024 * 1024),
        cost_estimate=pl.CostEstimate(flops=flops,
                                      transcendentals=rows * d_ff,
                                      bytes_accessed=bytes_accessed),
    )(x2d, w1, b1_2d, w2, b2_2d)
    return out2d.reshape(B, S, D)


# ---------------------------------------------------------------------------
# Full encoder (Pallas kernels for MHA / layer_norm / FFN; embeddings in JAX)
# ---------------------------------------------------------------------------
def transformer_encoder(tokens, params, *, n_head, padding_idx):
    B, S = tokens.shape
    emb, pe = params["embedding"], params["pe"]
    mask_f = jnp.broadcast_to(
        (tokens == padding_idx).astype(jnp.float32)[:, None, :], (B, S, S))
    x = jnp.take(emb, tokens, axis=0) + pe[None, :S, :]
    for lp in params["layers"]:
        attn = multi_head_self_attention(
            x, mask_f, lp["wq"], lp["bq"], lp["wk"], lp["bk"], lp["wv"], lp["bv"],
            n_head=n_head)
        x = x + layer_norm(attn, lp["gamma1"], lp["beta1"])
        f = feed_forward_network(x, lp["w1"], lp["b1"], lp["w2"], lp["b2"])
        x = x + layer_norm(f, lp["gamma2"], lp["beta2"])
    return x


# ---------------------------------------------------------------------------
# Pure-JAX reference (mirrors the PyTorch module semantics, eval mode)
# ---------------------------------------------------------------------------
def _ref_layer_norm(x, gamma, beta, eps=1e-8):
    mean = jnp.mean(x, -1, keepdims=True)
    var = jnp.sum((x - mean) ** 2, -1, keepdims=True) / (x.shape[-1] - 1)
    return gamma * ((x - mean) / (jnp.sqrt(var) + eps)) + beta


def _ref_mha(x, mask_f, wq, bq, wk, bk, wv, bv, n_head):
    B, S, D = x.shape
    d_k = D // n_head
    q = (x @ wq + bq).reshape(B, S, n_head, d_k).transpose(0, 2, 1, 3)
    k = (x @ wk + bk).reshape(B, S, n_head, d_k).transpose(0, 2, 1, 3)
    v = (x @ wv + bv).reshape(B, S, n_head, d_k).transpose(0, 2, 1, 3)
    s = jnp.einsum("bhqd,bhkd->bhqk", q, k) / math.sqrt(d_k)
    s = jnp.where(mask_f[:, None, :, :] > 0.0, -1e8, s)
    p = jax.nn.softmax(s, axis=-1)
    o = jnp.einsum("bhqk,bhkd->bhqd", p, v)
    return o.transpose(0, 2, 1, 3).reshape(B, S, D)


def _ref_ffn(x, w1, b1, w2, b2):
    return _gelu_spec(x @ w1 + b1) @ w2 + b2


def reference_encoder(tokens, params, *, n_head, padding_idx):
    B, S = tokens.shape
    emb, pe = params["embedding"], params["pe"]
    mask_f = jnp.broadcast_to(
        (tokens == padding_idx).astype(jnp.float32)[:, None, :], (B, S, S))
    x = jnp.take(emb, tokens, axis=0) + pe[None, :S, :]
    for lp in params["layers"]:
        attn = _ref_mha(x, mask_f, lp["wq"], lp["bq"], lp["wk"], lp["bk"],
                        lp["wv"], lp["bv"], n_head)
        x = x + _ref_layer_norm(attn, lp["gamma1"], lp["beta1"])
        f = _ref_ffn(x, lp["w1"], lp["b1"], lp["w2"], lp["b2"])
        x = x + _ref_layer_norm(f, lp["gamma2"], lp["beta2"])
    return x


# ---------------------------------------------------------------------------
# Parameter construction
# ---------------------------------------------------------------------------
def _linear_params(key, fan_in, fan_out, dtype=jnp.float32):
    kw, kb = jax.random.split(key)
    bound = 1.0 / math.sqrt(fan_in)
    w = jax.random.uniform(kw, (fan_in, fan_out), minval=-bound, maxval=bound, dtype=dtype)
    b = jax.random.uniform(kb, (fan_out,), minval=-bound, maxval=bound, dtype=dtype)
    return w, b


def _make_positional_table(max_len, d_model):
    pos = jnp.arange(max_len, dtype=jnp.float32)[:, None]
    div = (10000.0 ** (jnp.arange(d_model, dtype=jnp.float32) / d_model))[None, :]
    ang = pos / div[:, 0::2]
    pe = jnp.zeros((max_len, d_model), jnp.float32)
    pe = pe.at[:, 0::2].set(jnp.sin(ang))
    pe = pe.at[:, 1::2].set(jnp.cos(ang))
    return pe


def make_params(key, *, n_vocab, max_len, seq_len, d_model, d_ff, n_layers, padding_idx):
    keys = jax.random.split(key, n_layers + 1)
    emb = jax.random.normal(keys[0], (n_vocab, d_model), jnp.float32)
    emb = emb.at[padding_idx].set(0.0)                      # nn.Embedding padding_idx
    layers = []
    for li in range(n_layers):
        ks = jax.random.split(keys[li + 1], 6)
        wq, bq = _linear_params(ks[0], d_model, d_model)
        wk, bk = _linear_params(ks[1], d_model, d_model)
        wv, bv = _linear_params(ks[2], d_model, d_model)
        w1, b1 = _linear_params(ks[3], d_model, d_ff)
        w2, b2 = _linear_params(ks[4], d_ff, d_model)
        layers.append(dict(
            wq=wq, bq=bq, wk=wk, bk=bk, wv=wv, bv=bv,
            gamma1=jnp.ones((1, seq_len, d_model), jnp.float32),
            beta1=jnp.zeros((1, seq_len, d_model), jnp.float32),
            w1=w1, b1=b1, w2=w2, b2=b2,
            gamma2=jnp.ones((1, seq_len, d_model), jnp.float32),
            beta2=jnp.zeros((1, seq_len, d_model), jnp.float32),
        ))
    return dict(embedding=emb, pe=_make_positional_table(max_len, d_model), layers=layers)


if __name__ == "__main__":
    # Small shapes consistent with the module.
    batch, seq_len, d_model, d_ff = 2, 8, 32, 64
    n_head, n_layers, n_vocab, max_len, padding_idx = 4, 2, 50, 16, 0

    key = jax.random.PRNGKey(0)
    kp, kt = jax.random.split(key)
    params = make_params(kp, n_vocab=n_vocab, max_len=max_len, seq_len=seq_len,
                         d_model=d_model, d_ff=d_ff, n_layers=n_layers,
                         padding_idx=padding_idx)

    tokens = jax.random.randint(kt, (batch, seq_len), 1, n_vocab, dtype=jnp.int32)
    tokens = tokens.at[:, -1].set(padding_idx)              # exercise the padding mask

    out = transformer_encoder(tokens, params, n_head=n_head, padding_idx=padding_idx)
    out = jax.block_until_ready(out)

    ref = reference_encoder(tokens, params, n_head=n_head, padding_idx=padding_idx)
    ref = jax.block_until_ready(ref)

    assert out.shape == (batch, seq_len, d_model)
    assert jnp.all(jnp.isfinite(out)), "non-finite output"
    assert jnp.allclose(out, ref, atol=1e-3, rtol=1e-3), \
        f"mismatch vs reference: max abs diff {jnp.max(jnp.abs(out - ref))}"

    print("KERNEL_OK")
</pallas_src>

<mosaic_0001>
module attributes {stable_mosaic.version = 11 : i64} {
  func.func @_mha_kernel(%arg0: i32, %arg1: memref<1x8x32xf32, #tpu.memory_space<vmem>>, %arg2: memref<32x32xf32, #tpu.memory_space<vmem>>, %arg3: memref<1x32xf32, #tpu.memory_space<vmem>>, %arg4: memref<32x32xf32, #tpu.memory_space<vmem>>, %arg5: memref<1x32xf32, #tpu.memory_space<vmem>>, %arg6: memref<32x32xf32, #tpu.memory_space<vmem>>, %arg7: memref<1x32xf32, #tpu.memory_space<vmem>>, %arg8: memref<1x8x8xf32, #tpu.memory_space<vmem>>, %arg9: memref<1x8x32xf32, #tpu.memory_space<vmem>>) attributes {dimension_semantics = [#tpu.dimension_semantics<parallel>], iteration_bounds = array<i64: 2>, scalar_prefetch = 0 : i64, scratch_operands = 0 : i64, tpu.core_type = #tpu.core_type<tc>, window_params = [{transform_indices = @transform_0, window_bounds = array<i64: 1, 8, 32>}, {pipeline_mode = #tpu.pipeline_mode<synchronous>, transform_indices = @transform_1, window_bounds = array<i64: 32, 32>}, {pipeline_mode = #tpu.pipeline_mode<synchronous>, transform_indices = @transform_2, window_bounds = array<i64: 1, 32>}, {pipeline_mode = #tpu.pipeline_mode<synchronous>, transform_indices = @transform_3, window_bounds = array<i64: 32, 32>}, {pipeline_mode = #tpu.pipeline_mode<synchronous>, transform_indices = @transform_4, window_bounds = array<i64: 1, 32>}, {pipeline_mode = #tpu.pipeline_mode<synchronous>, transform_indices = @transform_5, window_bounds = array<i64: 32, 32>}, {pipeline_mode = #tpu.pipeline_mode<synchronous>, transform_indices = @transform_6, window_bounds = array<i64: 1, 32>}, {transform_indices = @transform_7, window_bounds = array<i64: 1, 8, 8>}, {transform_indices = @transform_8, window_bounds = array<i64: 1, 8, 32>}]} {
    %c0 = arith.constant 0 : index
    %c0_0 = arith.constant 0 : index
    %c0_1 = arith.constant 0 : index
    %0 = vector.load %arg1[%c0, %c0_0, %c0_1] : memref<1x8x32xf32, #tpu.memory_space<vmem>>, vector<1x8x32xf32>
    %1 = vector.shape_cast %0 : vector<1x8x32xf32> to vector<8x32xf32>
    %c0_2 = arith.constant 0 : index
    %c0_3 = arith.constant 0 : index
    %2 = vector.load %arg2[%c0_2, %c0_3] : memref<32x32xf32, #tpu.memory_space<vmem>>, vector<32x32xf32>
    %cst = arith.constant dense<0.000000e+00> : vector<8x32xf32>
    %3 = tpu.matmul %1, %2, %cst {dimension_numbers = #tpu.dot_dimension_numbers<[1], [0], [0], [1], [0, 0, 1, 1], [], []>, precision = #tpu.contract_precision<fp32>} : vector<8x32xf32>, vector<32x32xf32>, vector<8x32xf32> -> vector<8x32xf32>
    %c0_4 = arith.constant 0 : index
    %c0_5 = arith.constant 0 : index
    %4 = vector.load %arg3[%c0_4, %c0_5] : memref<1x32xf32, #tpu.memory_space<vmem>>, vector<1x32xf32>
    %5 = vector.broadcast %4 : vector<1x32xf32> to vector<8x32xf32>
    %6 = arith.addf %3, %5 : vector<8x32xf32>
    %c0_6 = arith.constant 0 : index
    %c0_7 = arith.constant 0 : index
    %7 = vector.load %arg4[%c0_6, %c0_7] : memref<32x32xf32, #tpu.memory_space<vmem>>, vector<32x32xf32>
    %cst_8 = arith.constant dense<0.000000e+00> : vector<8x32xf32>
    %8 = tpu.matmul %1, %7, %cst_8 {dimension_numbers = #tpu.dot_dimension_numbers<[1], [0], [0], [1], [0, 0, 1, 1], [], []>, precision = #tpu.contract_precision<fp32>} : vector<8x32xf32>, vector<32x32xf32>, vector<8x32xf32> -> vector<8x32xf32>
    %c0_9 = arith.constant 0 : index
    %c0_10 = arith.constant 0 : index
    %9 = vector.load %arg5[%c0_9, %c0_10] : memref<1x32xf32, #tpu.memory_space<vmem>>, vector<1x32xf32>
    %10 = vector.broadcast %9 : vector<1x32xf32> to vector<8x32xf32>
    %11 = arith.addf %8, %10 : vector<8x32xf32>
    %c0_11 = arith.constant 0 : index
    %c0_12 = arith.constant 0 : index
    %12 = vector.load %arg6[%c0_11, %c0_12] : memref<32x32xf32, #tpu.memory_space<vmem>>, vector<32x32xf32>
    %cst_13 = arith.constant dense<0.000000e+00> : vector<8x32xf32>
    %13 = tpu.matmul %1, %12, %cst_13 {dimension_numbers = #tpu.dot_dimension_numbers<[1], [0], [0], [1], [0, 0, 1, 1], [], []>, precision = #tpu.contract_precision<fp32>} : vector<8x32xf32>, vector<32x32xf32>, vector<8x32xf32> -> vector<8x32xf32>
    %c0_14 = arith.constant 0 : index
    %c0_15 = arith.constant 0 : index
    %14 = vector.load %arg7[%c0_14, %c0_15] : memref<1x32xf32, #tpu.memory_space<vmem>>, vector<1x32xf32>
    %15 = vector.broadcast %14 : vector<1x32xf32> to vector<8x32xf32>
    %16 = arith.addf %13, %15 : vector<8x32xf32>
    %c0_16 = arith.constant 0 : index
    %c0_17 = arith.constant 0 : index
    %c0_18 = arith.constant 0 : index
    %17 = vector.load %arg8[%c0_16, %c0_17, %c0_18] : memref<1x8x8xf32, #tpu.memory_space<vmem>>, vector<1x8x8xf32>
    %18 = vector.shape_cast %17 : vector<1x8x8xf32> to vector<8x8xf32>
    %19 = vector.extract_strided_slice %6 {offsets = [0, 0], sizes = [8, 8], strides = [1, 1]} : vector<8x32xf32> to vector<8x8xf32>
    %20 = vector.extract_strided_slice %11 {offsets = [0, 0], sizes = [8, 8], strides = [1, 1]} : vector<8x32xf32> to vector<8x8xf32>
    %21 = vector.extract_strided_slice %16 {offsets = [0, 0], sizes = [8, 8], strides = [1, 1]} : vector<8x32xf32> to vector<8x8xf32>
    %cst_19 = arith.constant dense<0.000000e+00> : vector<8x8xf32>
    %22 = tpu.matmul %19, %20, %cst_19 {dimension_numbers = #tpu.dot_dimension_numbers<[1], [1], [0], [0], [0, 0, 1, 0], [], []>, precision = #tpu.contract_precision<fp32>} : vector<8x8xf32>, vector<8x8xf32>, vector<8x8xf32> -> vector<8x8xf32>
    %cst_20 = arith.constant 0.353553385 : f32
    %23 = vector.broadcast %cst_20 : f32 to vector<8x8xf32>
    %24 = arith.mulf %22, %23 : vector<8x8xf32>
    %cst_21 = arith.constant 0.000000e+00 : f32
    %25 = vector.broadcast %cst_21 : f32 to vector<8x8xf32>
    %26 = arith.cmpf ogt, %18, %25 : vector<8x8xf32>
    %cst_22 = arith.constant -1.000000e+08 : f32
    %27 = vector.broadcast %cst_22 : f32 to vector<8x8xf32>
    %28 = arith.select %26, %27, %24 : vector<8x8xi1>, vector<8x8xf32>
    %cst_23 = arith.constant dense<0xFF800000> : vector<8xf32>
    %29 = vector.multi_reduction <maximumf>, %28, %cst_23 [1] : vector<8x8xf32> to vector<8xf32>
    %30 = vector.shape_cast %29 : vector<8xf32> to vector<8x1xf32>
    %31 = vector.broadcast %30 : vector<8x1xf32> to vector<8x8xf32>
    %32 = arith.subf %28, %31 : vector<8x8xf32>
    %33 = math.exp %32 : vector<8x8xf32>
    %cst_24 = arith.constant dense<0.000000e+00> : vector<8xf32>
    %34 = vector.multi_reduction <add>, %33, %cst_24 [1] : vector<8x8xf32> to vector<8xf32>
    %35 = vector.shape_cast %34 : vector<8xf32> to vector<8x1xf32>
    %36 = vector.broadcast %35 : vector<8x1xf32> to vector<8x8xf32>
    %37 = arith.divf %33, %36 : vector<8x8xf32>
    %cst_25 = arith.constant dense<0.000000e+00> : vector<8x8xf32>
    %38 = tpu.matmul %37, %21, %cst_25 {dimension_numbers = #tpu.dot_dimension_numbers<[1], [0], [0], [1], [0, 0, 1, 1], [], []>, precision = #tpu.contract_precision<fp32>} : vector<8x8xf32>, vector<8x8xf32>, vector<8x8xf32> -> vector<8x8xf32>
    %39 = vector.extract_strided_slice %6 {offsets = [0, 8], sizes = [8, 8], strides = [1, 1]} : vector<8x32xf32> to vector<8x8xf32>
    %40 = vector.extract_strided_slice %11 {offsets = [0, 8], sizes = [8, 8], strides = [1, 1]} : vector<8x32xf32> to vector<8x8xf32>
    %41 = vector.extract_strided_slice %16 {offsets = [0, 8], sizes = [8, 8], strides = [1, 1]} : vector<8x32xf32> to vector<8x8xf32>
    %cst_26 = arith.constant dense<0.000000e+00> : vector<8x8xf32>
    %42 = tpu.matmul %39, %40, %cst_26 {dimension_numbers = #tpu.dot_dimension_numbers<[1], [1], [0], [0], [0, 0, 1, 0], [], []>, precision = #tpu.contract_precision<fp32>} : vector<8x8xf32>, vector<8x8xf32>, vector<8x8xf32> -> vector<8x8xf32>
    %cst_27 = arith.constant 0.353553385 : f32
    %43 = vector.broadcast %cst_27 : f32 to vector<8x8xf32>
    %44 = arith.mulf %42, %43 : vector<8x8xf32>
    %cst_28 = arith.constant 0.000000e+00 : f32
    %45 = vector.broadcast %cst_28 : f32 to vector<8x8xf32>
    %46 = arith.cmpf ogt, %18, %45 : vector<8x8xf32>
    %cst_29 = arith.constant -1.000000e+08 : f32
    %47 = vector.broadcast %cst_29 : f32 to vector<8x8xf32>
    %48 = arith.select %46, %47, %44 : vector<8x8xi1>, vector<8x8xf32>
    %cst_30 = arith.constant dense<0xFF800000> : vector<8xf32>
    %49 = vector.multi_reduction <maximumf>, %48, %cst_30 [1] : vector<8x8xf32> to vector<8xf32>
    %50 = vector.shape_cast %49 : vector<8xf32> to vector<8x1xf32>
    %51 = vector.broadcast %50 : vector<8x1xf32> to vector<8x8xf32>
    %52 = arith.subf %48, %51 : vector<8x8xf32>
    %53 = math.exp %52 : vector<8x8xf32>
    %cst_31 = arith.constant dense<0.000000e+00> : vector<8xf32>
    %54 = vector.multi_reduction <add>, %53, %cst_31 [1] : vector<8x8xf32> to vector<8xf32>
    %55 = vector.shape_cast %54 : vector<8xf32> to vector<8x1xf32>
    %56 = vector.broadcast %55 : vector<8x1xf32> to vector<8x8xf32>
    %57 = arith.divf %53, %56 : vector<8x8xf32>
    %cst_32 = arith.constant dense<0.000000e+00> : vector<8x8xf32>
    %58 = tpu.matmul %57, %41, %cst_32 {dimension_numbers = #tpu.dot_dimension_numbers<[1], [0], [0], [1], [0, 0, 1, 1], [], []>, precision = #tpu.contract_precision<fp32>} : vector<8x8xf32>, vector<8x8xf32>, vector<8x8xf32> -> vector<8x8xf32>
    %59 = vector.extract_strided_slice %6 {offsets = [0, 16], sizes = [8, 8], strides = [1, 1]} : vector<8x32xf32> to vector<8x8xf32>
    %60 = vector.extract_strided_slice %11 {offsets = [0, 16], sizes = [8, 8], strides = [1, 1]} : vector<8x32xf32> to vector<8x8xf32>
    %61 = vector.extract_strided_slice %16 {offsets = [0, 16], sizes = [8, 8], strides = [1, 1]} : vector<8x32xf32> to vector<8x8xf32>
    %cst_33 = arith.constant dense<0.000000e+00> : vector<8x8xf32>
    %62 = tpu.matmul %59, %60, %cst_33 {dimension_numbers = #tpu.dot_dimension_numbers<[1], [1], [0], [0], [0, 0, 1, 0], [], []>, precision = #tpu.contract_precision<fp32>} : vector<8x8xf32>, vector<8x8xf32>, vector<8x8xf32> -> vector<8x8xf32>
    %cst_34 = arith.constant 0.353553385 : f32
    %63 = vector.broadcast %cst_34 : f32 to vector<8x8xf32>
    %64 = arith.mulf %62, %63 : vector<8x8xf32>
    %cst_35 = arith.constant 0.000000e+00 : f32
    %65 = vector.broadcast %cst_35 : f32 to vector<8x8xf32>
    %66 = arith.cmpf ogt, %18, %65 : vector<8x8xf32>
    %cst_36 = arith.constant -1.000000e+08 : f32
    %67 = vector.broadcast %cst_36 : f32 to vector<8x8xf32>
    %68 = arith.select %66, %67, %64 : vector<8x8xi1>, vector<8x8xf32>
    %cst_37 = arith.constant dense<0xFF800000> : vector<8xf32>
    %69 = vector.multi_reduction <maximumf>, %68, %cst_37 [1] : vector<8x8xf32> to vector<8xf32>
    %70 = vector.shape_cast %69 : vector<8xf32> to vector<8x1xf32>
    %71 = vector.broadcast %70 : vector<8x1xf32> to vector<8x8xf32>
    %72 = arith.subf %68, %71 : vector<8x8xf32>
    %73 = math.exp %72 : vector<8x8xf32>
    %cst_38 = arith.constant dense<0.000000e+00> : vector<8xf32>
    %74 = vector.multi_reduction <add>, %73, %cst_38 [1] : vector<8x8xf32> to vector<8xf32>
    %75 = vector.shape_cast %74 : vector<8xf32> to vector<8x1xf32>
    %76 = vector.broadcast %75 : vector<8x1xf32> to vector<8x8xf32>
    %77 = arith.divf %73, %76 : vector<8x8xf32>
    %cst_39 = arith.constant dense<0.000000e+00> : vector<8x8xf32>
    %78 = tpu.matmul %77, %61, %cst_39 {dimension_numbers = #tpu.dot_dimension_numbers<[1], [0], [0], [1], [0, 0, 1, 1], [], []>, precision = #tpu.contract_precision<fp32>} : vector<8x8xf32>, vector<8x8xf32>, vector<8x8xf32> -> vector<8x8xf32>
    %79 = vector.extract_strided_slice %6 {offsets = [0, 24], sizes = [8, 8], strides = [1, 1]} : vector<8x32xf32> to vector<8x8xf32>
    %80 = vector.extract_strided_slice %11 {offsets = [0, 24], sizes = [8, 8], strides = [1, 1]} : vector<8x32xf32> to vector<8x8xf32>
    %81 = vector.extract_strided_slice %16 {offsets = [0, 24], sizes = [8, 8], strides = [1, 1]} : vector<8x32xf32> to vector<8x8xf32>
    %cst_40 = arith.constant dense<0.000000e+00> : vector<8x8xf32>
    %82 = tpu.matmul %79, %80, %cst_40 {dimension_numbers = #tpu.dot_dimension_numbers<[1], [1], [0], [0], [0, 0, 1, 0], [], []>, precision = #tpu.contract_precision<fp32>} : vector<8x8xf32>, vector<8x8xf32>, vector<8x8xf32> -> vector<8x8xf32>
    %cst_41 = arith.constant 0.353553385 : f32
    %83 = vector.broadcast %cst_41 : f32 to vector<8x8xf32>
    %84 = arith.mulf %82, %83 : vector<8x8xf32>
    %cst_42 = arith.constant 0.000000e+00 : f32
    %85 = vector.broadcast %cst_42 : f32 to vector<8x8xf32>
    %86 = arith.cmpf ogt, %18, %85 : vector<8x8xf32>
    %cst_43 = arith.constant -1.000000e+08 : f32
    %87 = vector.broadcast %cst_43 : f32 to vector<8x8xf32>
    %88 = arith.select %86, %87, %84 : vector<8x8xi1>, vector<8x8xf32>
    %cst_44 = arith.constant dense<0xFF800000> : vector<8xf32>
    %89 = vector.multi_reduction <maximumf>, %88, %cst_44 [1] : vector<8x8xf32> to vector<8xf32>
    %90 = vector.shape_cast %89 : vector<8xf32> to vector<8x1xf32>
    %91 = vector.broadcast %90 : vector<8x1xf32> to vector<8x8xf32>
    %92 = arith.subf %88, %91 : vector<8x8xf32>
    %93 = math.exp %92 : vector<8x8xf32>
    %cst_45 = arith.constant dense<0.000000e+00> : vector<8xf32>
    %94 = vector.multi_reduction <add>, %93, %cst_45 [1] : vector<8x8xf32> to vector<8xf32>
    %95 = vector.shape_cast %94 : vector<8xf32> to vector<8x1xf32>
    %96 = vector.broadcast %95 : vector<8x1xf32> to vector<8x8xf32>
    %97 = arith.divf %93, %96 : vector<8x8xf32>
    %cst_46 = arith.constant dense<0.000000e+00> : vector<8x8xf32>
    %98 = tpu.matmul %97, %81, %cst_46 {dimension_numbers = #tpu.dot_dimension_numbers<[1], [0], [0], [1], [0, 0, 1, 1], [], []>, precision = #tpu.contract_precision<fp32>} : vector<8x8xf32>, vector<8x8xf32>, vector<8x8xf32> -> vector<8x8xf32>
    %99 = tpu.concatenate %38, %58, %78, %98 in 1 : vector<8x8xf32>, vector<8x8xf32>, vector<8x8xf32>, vector<8x8xf32> -> vector<8x32xf32>
    %c0_47 = arith.constant 0 : index
    %c0_48 = arith.constant 0 : index
    %c0_49 = arith.constant 0 : index
    %100 = vector.load %arg9[%c0_47, %c0_48, %c0_49] : memref<1x8x32xf32, #tpu.memory_space<vmem>>, vector<1x8x32xf32>
    %101 = vector.shape_cast %100 : vector<1x8x32xf32> to vector<8x32xf32>
    %102 = vector.shape_cast %99 : vector<8x32xf32> to vector<1x8x32xf32>
    tpu.vector_store %arg9[%c0_47, %c0_48, %c0_49], %102 {strides = array<i32>} : memref<1x8x32xf32, #tpu.memory_space<vmem>>, vector<1x8x32xf32>,
    return
  }
  func.func @transform_0(%arg0: i32) -> (i32, i32, i32) {
    %c0_i32 = arith.constant 0 : i32
    %c0_i32_0 = arith.constant 0 : i32
    %c0_i32_1 = arith.constant 0 : i32
    return %arg0, %c0_i32, %c0_i32_0 : i32, i32, i32
  }
  func.func @transform_1(%arg0: i32) -> (i32, i32) {
    %c0_i32 = arith.constant 0 : i32
    %c0_i32_0 = arith.constant 0 : i32
    %c0_i32_1 = arith.constant 0 : i32
    return %c0_i32, %c0_i32_0 : i32, i32
  }
  func.func @transform_2(%arg0: i32) -> (i32, i32) {
    %c0_i32 = arith.constant 0 : i32
    %c0_i32_0 = arith.constant 0 : i32
    %c0_i32_1 = arith.constant 0 : i32
    return %c0_i32, %c0_i32_0 : i32, i32
  }
  func.func @transform_3(%arg0: i32) -> (i32, i32) {
    %c0_i32 = arith.constant 0 : i32
    %c0_i32_0 = arith.constant 0 : i32
    %c0_i32_1 = arith.constant 0 : i32
    return %c0_i32, %c0_i32_0 : i32, i32
  }
  func.func @transform_4(%arg0: i32) -> (i32, i32) {
    %c0_i32 = arith.constant 0 : i32
    %c0_i32_0 = arith.constant 0 : i32
    %c0_i32_1 = arith.constant 0 : i32
    return %c0_i32, %c0_i32_0 : i32, i32
  }
  func.func @transform_5(%arg0: i32) -> (i32, i32) {
    %c0_i32 = arith.constant 0 : i32
    %c0_i32_0 = arith.constant 0 : i32
    %c0_i32_1 = arith.constant 0 : i32
    return %c0_i32, %c0_i32_0 : i32, i32
  }
  func.func @transform_6(%arg0: i32) -> (i32, i32) {
    %c0_i32 = arith.constant 0 : i32
    %c0_i32_0 = arith.constant 0 : i32
    %c0_i32_1 = arith.constant 0 : i32
    return %c0_i32, %c0_i32_0 : i32, i32
  }
  func.func @transform_7(%arg0: i32) -> (i32, i32, i32) {
    %c0_i32 = arith.constant 0 : i32
    %c0_i32_0 = arith.constant 0 : i32
    %c0_i32_1 = arith.constant 0 : i32
    return %arg0, %c0_i32, %c0_i32_0 : i32, i32, i32
  }
  func.func @transform_8(%arg0: i32) -> (i32, i32, i32) {
    %c0_i32 = arith.constant 0 : i32
    %c0_i32_0 = arith.constant 0 : i32
    %c0_i32_1 = arith.constant 0 : i32
    return %arg0, %c0_i32, %c0_i32_0 : i32, i32, i32
  }
}

</mosaic_0001>

<bundles_post_ra>
// kernel: tpu_custom_call.1
= control target key start
LH: loop header
LB: loop body
LE: loop exit
PB: predicated region body
PF: predicated region fallthrough
CT: control target
= control target key end

     0   :  { %13 = vsyncpa [#allocation3], 0  ;;  %s7591_s0 = inlined_call_operand.hbm [shape: f32[2,8,32], index: 0, kind: input, shape index: {}]   ;;  %s7592_s1 = inlined_call_operand.hbm [shape: f32[32,32], index: 1, kind: input, shape index: {}]   ;;  %s7593_s2 = inlined_call_operand.vmem [shape: f32[1,32], index: 2, kind: input, shape index: {}]   ;;  %s7594_s3 = inlined_call_operand.hbm [shape: f32[32,32], index: 3, kind: input, shape index: {}]   ;;  %s7595_s4 = inlined_call_operand.vmem [shape: f32[1,32], index: 4, kind: input, shape index: {}]   ;;  %s7596_s5 = inlined_call_operand.hbm [shape: f32[32,32], index: 5, kind: input, shape index: {}]   ;;  %s7597_s6 = inlined_call_operand.vmem [shape: f32[1,32], index: 6, kind: input, shape index: {}]   ;;  %s7598_s7 = inlined_call_operand.vmem [shape: f32[2,8,8], index: 7, kind: input, shape index: {}]   ;;  %s7599_s8 = inlined_call_operand.hbm [shape: f32[2,8,32], index: 8, kind: output, shape index: {}]  }
   0x1   :  { %15 = vsyncpa [#allocation3 + $0x1], 0 }
   0x2   :  { %16 = vsyncpa [#allocation6], 0 }
   0x3   :  { %17 = vsyncpa [#allocation9], 0 }
   0x4   :  { %18 = vsyncpa [#allocation4], 0 }
   0x5   :  { %20 = vsyncpa [#allocation4 + $0x1], 0  ;;  %s6915_s27 = smov 0   ;;  %s6917_s28 = smov 0  }
   0x6   :  { %s6919_s29 = smov 0   ;;  %s6921_s30 = smov 0  }
   0x7 LB: > { %7605 = sst [smem:[#allocation15_spill]] %s6840_s27  ;;  %s6936_s9 = sadd.s32 4294967295, %s6852_s30   ;;  %s6852_s30 = sphi %s6921_s30, %s7628_s30   ;;  %s6848_s29 = sphi %s6919_s29, %s7627_s29   ;;  %s6844_s28 = sphi %s6917_s28, %s7626_s28   ;;  %s6840_s27 = sphi %s6915_s27, %s7625_s27  }
   0x8   : > { %s5693_s10 = sadd.s32 4294967294, %s6852_s30   ;;  %p46_p0 = scmp.ne.s32.totalorder %s6844_s28, %s6840_s27 }
   0x9   : > { %p7600_p1 = scmp.eq.s32.totalorder %s6936_s9, 0  ;;  %p228_p3 = scmp.eq.s32.totalorder %s5693_s10, 1 }
   0xa   : > { %p5694_p5 = scmp.ge.s32.totalorder %s6852_s30, 1  ;;  %p235_p7 = scmp.lt.s32.totalorder %s6852_s30, 3 }
   0xb   : > { %p6945_p4 = por %p7600_p1, %p46_p0  ;;  %p6950_p6 = por %p228_p3, %p46_p0 }
   0xc   : > { %p6955_p8 = pnand %p5694_p5, %p235_p7  ;;  %s6854_s14 = smov [#allocation5]  }
   0xd   : > { %s7606_s11 = scalar_select %p6945_p4, 1, 0 }
   0xe   : > { %s7607_s12 = scalar_select %p6950_p6, 1, 0 }
   0xf   : > { %s7609_s13 = scalar_select %p6955_p8, 1, 0 }
  0x10   : > { %7608 = sst [smem:[#allocation16_spill]] %s7607_s12  ;;  %s247_s15 = sshll.u32 %s6854_s14, 4  ;;  %s6959_s15 = int_to_ptr.vmem [resolvable:$true] %s247_s15 }
  0x11   : > { %p6576_p9 = pneg %p6955_p8  ;;  %s6855_s17 = smov [#allocation7]  }
  0x12   : > { %s263_s18 = sshll.u32 %s6855_s17, 4  ;;  %s6856_s19 = smov [#allocation8]   ;;  %s6970_s18 = int_to_ptr.vmem [resolvable:$true] %s263_s18 }
  0x13   : > { %p6966_p11 = pnand %p6576_p9, %p7600_p1  ;;  %s6972_s20 = sshll.u32 %s6856_s19, 4  ;;  %s280_s20 = int_to_ptr.vmem [resolvable:$true] %s6972_s20 }
  0x14   : > { %s6664_s23 = scalar_lea.hbm %s7592_s1, 512 }
  0x15   : > { %p6665_p12 = scmp.ne.s32.totalorder %s7592_s1, %s6664_s23  ;;  %p6982_p13 = pneg %p6966_p11 }
  0x16   : > { %p6671_p5 = scmp.lt.u32.totalorder %s6664_s23, %s7592_s1 }
  0x17   : > { %p6667_p0 = pnand %p6982_p13, %p6665_p12 }
  0x19   : > { %p6668_p3 = pneg %p6667_p0 }
  0x1b   : > { %p6673_p7 = pnand %p6671_p5, %p6668_p3 }
  0x1d   : > { %6676 = shalt.err (!%p6673_p7)
}
  0x1e   : > { %s6677_s17 = scalar_lea.vmem %s6959_s15, 512  ;;  %p6685_p2 = scmp.lt.s32.totalorder %s6959_s15, %s6959_s15 }
  0x1f   : > { %p6678_p9 = scmp.ne.s32.totalorder %s6959_s15, %s6677_s17  ;;  %p6686_p6 = scmp.lt.s32.totalorder %s6677_s17, %s6677_s17 }
  0x21   : > { %p6680_p10 = pnand %p6678_p9, %p6982_p13  ;;  %p6687_p12 = por %p6686_p6, %p6685_p2 }
  0x23   : > { %p6681_p1 = pneg %p6680_p10 }
  0x25   : > { %p6688_p0 = pnand %p6687_p12, %p6681_p1 }
  0x27   : > { %6691 = shalt.err (!%p6688_p0)
}
  0x28   : > { %s6857_s19 = smov 128   ;;  %s6858_s21 = smov 8  }
  0x29   : > { %6579 = dma.hbm_to_vmem [thread:$0]  (!%p6966_p11), %s7592_s1, 512, %s6959_s15, [#allocation6], %s6857_s19, %s6857_s19, %s6858_s21  }
  0x2a   : > { %s6692_s10 = scalar_lea.hbm %s7594_s3, 512 }
  0x2b   : > { %p6693_p1 = scmp.ne.s32.totalorder %s7594_s3, %s6692_s10  ;;  %p6699_p10 = scmp.lt.u32.totalorder %s6692_s10, %s7594_s3 }
  0x2d   : > { %p6695_p2 = pnand %p6693_p1, %p6982_p13 }
  0x2f   : > { %p6696_p6 = pneg %p6695_p2 }
  0x31   : > { %p6701_p3 = pnand %p6699_p10, %p6696_p6 }
  0x33   : > { %6704 = shalt.err (!%p6701_p3)
}
  0x34   : > { %s6705_s15 = scalar_lea.vmem %s6970_s18, 512  ;;  %p6713_p12 = scmp.lt.s32.totalorder %s6970_s18, %s6970_s18 }
  0x35   : > { %p6706_p5 = scmp.ne.s32.totalorder %s6970_s18, %s6705_s15  ;;  %p6714_p0 = scmp.lt.s32.totalorder %s6705_s15, %s6705_s15 }
  0x37   : > { %p6708_p7 = pnand %p6706_p5, %p6982_p13  ;;  %p6715_p1 = por %p6714_p0, %p6713_p12 }
  0x39   : > { %p6709_p9 = pneg %p6708_p7 }
  0x3b   : > { %p6716_p2 = pnand %p6715_p1, %p6709_p9 }
  0x3d   : > { %6719 = shalt.err (!%p6716_p2)
}
  0x3e   : > { %6582 = dma.hbm_to_vmem [thread:$0]  (!%p6966_p11), %s7594_s3, 512, %s6970_s18, [#allocation6], %s6857_s19, %s6857_s19, %s6858_s21  }
  0x3f   : > { %s6720_s24 = scalar_lea.hbm %s7596_s5, 512 }
  0x40   : > { %p6721_p6 = scmp.ne.s32.totalorder %s7596_s5, %s6720_s24  ;;  %p6727_p5 = scmp.lt.u32.totalorder %s6720_s24, %s7596_s5 }
  0x42   : > { %p6723_p10 = pnand %p6721_p6, %p6982_p13 }
  0x44   : > { %p6724_p3 = pneg %p6723_p10 }
  0x46   : > { %p6729_p7 = pnand %p6727_p5, %p6724_p3 }
  0x48   : > { %6732 = shalt.err (!%p6729_p7)
}
  0x49   : > { %s6733_s15 = scalar_lea.vmem %s280_s20, 512  ;;  %p6741_p1 = scmp.lt.s32.totalorder %s280_s20, %s280_s20 }
  0x4a   : > { %p6734_p9 = scmp.ne.s32.totalorder %s280_s20, %s6733_s15  ;;  %p6742_p2 = scmp.lt.s32.totalorder %s6733_s15, %s6733_s15 }
  0x4c   : > { %p6736_p12 = pnand %p6734_p9, %p6982_p13  ;;  %p6743_p4 = por %p6742_p2, %p6741_p1 }
  0x4e   : > { %p6737_p0 = pneg %p6736_p12 }
  0x50   : > { %p6744_p8 = pnand %p6743_p4, %p6737_p0 }
  0x52   : > { %6747 = shalt.err (!%p6744_p8)
}
  0x53   : > { %6585 = dma.hbm_to_vmem [thread:$0]  (!%p6966_p11), %s7596_s5, 512, %s280_s20, [#allocation9], %s6857_s19, %s6857_s19, %s6858_s21  }
  0x54   : > { %s7055_s26 = sadd.s32 1, %s6852_s30   ;;  %s33_s12 = sadd.s32 1, %s6848_s29 }
  0x55   : > { %s30_s16 = ssub.s32 %s6852_s30, %s7055_s26  ;;  %p40_p8 = scmp.ne.s32.totalorder %s6848_s29, %s6844_s28 }
  0x56   : > { %p31_p4 = scmp.eq.s32.totalorder %s30_s16, 0  ;;  %p41_p13 = scmp.eq.s32.totalorder %s6852_s30, 0 }
  0x57   : > { %p6597_p6 = scmp.lt.s32.totalorder %s6852_s30, 2  ;;  %p7612_p3 = scmp.eq.s32.totalorder %s6936_s9, 1 }
  0x58   : > { %s7065_s22 = scalar_select %p31_p4, %s6848_s29, %s33_s12  }
  0x59   : > { %p42_p10 = por %p41_p13, %p40_p8  ;;  %p7069_p5 = por %p7612_p3, %p40_p8 }
  0x5a   : > { %s296_s24 = sand.u32 1, %s6848_s29   ;;  %s5700_s25 = sshll.u32 %s6852_s30, 7 }
  0x5b   : > { %s5699_s20 = sshll.u32 %s296_s24, 3  ;;  %s7078_s10 = scalar_lea.hbm %s7591_s0, %s5700_s25 }
  0x5c   : > { %s300_s14 = scalar_lea.vmem [#allocation2], %s5699_s20  ;;  %p7080_p11 = pnand %p6597_p6, %p42_p10 }
  0x5d   : > { %s307_s17 = sshll.u32 %s300_s14, 4  ;;  %s297_s18 = scalar_lea.sflag [#allocation3], %s296_s24  ;;  %s7084_s17 = int_to_ptr.vmem [resolvable:$true] %s307_s17 }
  0x5e   : > { %s6748_s27 = scalar_lea.hbm %s7078_s10, 128  ;;  %p6750_p9 = pneg %p7080_p11 }
  0x5f   : > { %p6749_p7 = scmp.ne.s32.totalorder %s7078_s10, %s6748_s27  ;;  %s6753_s25 = scalar_lea.hbm %s7591_s0, 256 }
  0x60   : > { %p6754_p1 = scmp.lt.u32.totalorder %s7078_s10, %s7591_s0  ;;  %p6755_p2 = scmp.lt.u32.totalorder %s6753_s25, %s6748_s27 }
  0x61   : > { %p6751_p12 = pnand %p6750_p9, %p6749_p7  ;;  %p6757_p8 = scmp.lt.u32.totalorder %s6748_s27, %s7078_s10 }
  0x62   : > { %p6756_p4 = por %p6755_p2, %p6754_p1 }
  0x63   : > { %p6752_p0 = pneg %p6751_p12 }
  0x64   : > { %p6758_p13 = por %p6757_p8, %p6756_p4 }
  0x66   : > { %p6759_p6 = pnand %p6758_p13, %p6752_p0 }
  0x68   : > { %6762 = shalt.err (!%p6759_p6)
}
  0x69   : > { %s6763_s24 = scalar_lea.vmem %s7084_s17, 128  ;;  %s6859_s21 = smov [#allocation2]  }
  0x6a   : > { %p6764_p10 = scmp.ne.s32.totalorder %s7084_s17, %s6763_s24  ;;  %s6768_s14 = sshll.u32 %s6859_s21, 4  ;;  %s6769_s14 = int_to_ptr.vmem [resolvable:$false] %s6768_s14 }
  0x6b   : > { %s6770_s16 = scalar_lea.vmem %s6769_s14, 256  ;;  %p6771_p12 = scmp.lt.s32.totalorder %s7084_s17, %s6769_s14 }
  0x6c   : > { %p6766_p3 = pnand %p6764_p10, %p6750_p9  ;;  %p6772_p1 = scmp.lt.s32.totalorder %s6770_s16, %s6763_s24 }
  0x6e   : > { %p6767_p7 = pneg %p6766_p3  ;;  %p6773_p2 = por %p6772_p1, %p6771_p12 }
  0x70   : > { %p6774_p4 = pnand %p6773_p2, %p6767_p7 }
  0x72   : > { %6777 = shalt.err (!%p6774_p4)
}
  0x73   : > { %6589 = dma.hbm_to_vmem [thread:$0]  (!%p7080_p11), %s7078_s10, 128, %s7084_s17, %s297_s18  }
  0x74   : > { %p7615_p0 = scmp.ne.s32.totalorder %s7609_s13, 0 }
  0x75   : > { %s7114_s27 = sand.u32 (!%p7615_p0), 1, %s6844_s28   ;;  %p7616_p9 = scmp.ne.s32.totalorder (!%p7615_p0), %s7606_s11, 0 }
  0x76   : > { %323 = sbr.rel (%p7615_p0) target bundleno = 1583 (0x62f), region = 52  ;;  %s5702_s12 = sshll.u32 (!%p7615_p0), %s7114_s27, 3 }
  0x77   : > { %s326_s25 = scalar_lea.sflag (!%p7615_p0), [#allocation3], %s7114_s27  ;;  %s329_s20 = scalar_lea.vmem (!%p7615_p0), [#allocation2], %s5702_s12 }
  0x7d   : > { %6823 = dma.done.wait (%p7616_p9), %s326_s25, 128  }
  0x7e   : > { %6825 = vsyncadd (%p7616_p9), %s326_s25, 4294967168  ;;  %p7617_p11 = scmp.eq.s32.totalorder %s6936_s9, 0 }
  0x80   : > { %6827 = dma.done.wait (%p7617_p11), [#allocation6], 1024   ;;  %p7618_p8 = pmov %p7617_p11 }
  0x82   : > { %6829 = vsyncadd (%p7618_p8), [#allocation6], 4294966272  ;;  %p7619_p13 = pmov %p7618_p8 }
  0x83   : > { %p7620_p6 = pmov %p7618_p8 }
  0x84   : > { %6831 = dma.done.wait (%p7619_p13), [#allocation9], 512  }
  0x85   : > { %6833 = vsyncadd (%p7620_p6), [#allocation9], 4294966784  ;;  %v6860_v0 = vmov 0.0|0.0   ;;  %vm6861_vm0 = vmmov 0   ;;  %v6862_v1 = vmov 0.0   ;;  %v383_v2 = vld [vmem:[#allocation5] sm:$0xff] }
  0x86   : > { %6339 = vmatprep.subr.bf16.mxu0 %v6860_v0  ;;  %6375 = vmatprep.subr.bf16.mxu1 %v6860_v0  ;;  %v384_v3 = vld [vmem:[#allocation5 + $0x8] sm:$0xff]  ;;  %v883_v4 = vld [vmem:[#allocation7] sm:$0xff]  ;;  %vm394_vm1 = vcmask 261120   ;;  %v399_v5 = vand.u32 4294901760, %v383_v2  ;;  %v385_v9 = vld [vmem:[#allocation5 + $0x10] sm:$0xff]  ;;  %vm1876_vm2 = vcmask 64512  }
  0x87   : > { %5909 = vmatprep.mubr.msk.f32.mxu0 %vm6861_vm0, %v6862_v1  ;;  %5975 = vmatprep.mubr.msk.f32.mxu1 %vm6861_vm0, %v6862_v1  ;;  %v402_v6 = vand.u32 4294901760, %v384_v3  ;;  %v884_v7 = vld [vmem:[#allocation7 + $0x8] sm:$0xff]  ;;  %v895_v8 = vand.u32 4294901760, %v883_v4  ;;  %v386_v10 = vld [vmem:[#allocation5 + $0x18] sm:$0xff]  ;;  %v405_v12 = vand.u32 4294901760, %v385_v9  ;;  %v885_v14 = vld [vmem:[#allocation7 + $0x10] sm:$0xff] }
  0x88   : > { %v898_v11 = vand.u32 4294901760, %v884_v7  ;;  %v408_v13 = vand.u32 4294901760, %v386_v10  ;;  %v886_v15 = vld [vmem:[#allocation7 + $0x18] sm:$0xff]  ;;  %v7140_v18 = vsub.f32 %v383_v2, %v399_v5  ;;  %v901_v26 = vand.u32 4294901760, %v885_v14  ;;  %s6863_s15 = smov 112   ;;  %s6864_s18 = smov 120  }
  0x89   : > { %v382_v16 = vld [vmem:[%s329_s20] sm:$0xff]  ;;  %v7138_v17 = vpack.c.bf16 %v402_v6, %v399_v5  ;;  %v7142_v19 = vsub.f32 %v384_v3, %v402_v6  ;;  %v7144_v20 = vsub.f32 %v883_v4, %v895_v8  ;;  %v7152_v24 = vsub.f32 %v385_v9, %v405_v12  ;;  %s6865_s19 = smov 104   ;;  %p378_p10 = scmp.lt.s32.totalorder %s6936_s9, 1 }
  0x8a   : > { %v7146_v21 = vpack.c.bf16 %v898_v11, %v895_v8  ;;  %v7148_v22 = vsub.f32 %v884_v7, %v898_v11  ;;  %v7150_v23 = vpack.c.bf16 %v408_v13, %v405_v12  ;;  %v7155_v25 = vsub.f32 %v386_v10, %v408_v13  ;;  %v1379_v11 = vld [vmem:[#allocation8] sm:$0xff]  ;;  %v1380_v12 = vld [vmem:[#allocation8 + $0x8] sm:$0xff]  ;;  %s6866_s13 = smov 8   ;;  %s6867_s10 = smov 16  }
  0x8b   : > { %6341 = vmatpush3.bf16.msra.mxu0 %v7138_v17  ;;  %v904_v27 = vand.u32 4294901760, %v886_v15  ;;  %v396_v28 = vsel %vm394_vm1, %v382_v16, 0  ;;  %v480_v30 = vand.u32 4294901760, %v7140_v18  ;;  %v487_v31 = vand.u32 4294901760, %v7142_v19  ;;  %v1382_v16 = vld [vmem:[#allocation8 + $0x18] sm:$0xff]  ;;  %s379_s14 = scalar_select %p378_p10, %s6936_s9, 1 }
  0x8c   : > { %6377 = vmatpush3.bf16.msra.mxu1 %v7146_v21  ;;  %6342 = vmatprep.subr.bf16.mxu0 %v6860_v0  ;;  %v7160_v29 = vand.u32 4294901760, %v396_v28  ;;  %v976_v32 = vand.u32 4294901760, %v7144_v20  ;;  %v7168_v34 = vsub.f32 %v885_v14, %v901_v26  ;;  %v983_v36 = vand.u32 4294901760, %v7148_v22  ;;  %s6868_s17 = smov 24  }
  0x8d   : > { %6378 = vmatprep.subr.bf16.mxu1 %v6860_v0  ;;  %v7166_v33 = vpack.c.bf16 %v904_v27, %v901_v26  ;;  %v7170_v35 = vsub.f32 %v886_v15, %v904_v27  ;;  %v481_v38 = vsub.f32 %v7140_v18, %v480_v30  ;;  %v488_v39 = vsub.f32 %v7142_v19, %v487_v31  ;;  %v1381_v15 = vld [vmem:[#allocation8 + $0x10] sm:$0xff]  ;;  %s5707_s16 = sshll.u32 %s379_s14, 3 }
  0x8e   : > { %v7174_v37 = vsub.f32 %v396_v28, %v7160_v29  ;;  %v977_v40 = vsub.f32 %v7144_v20, %v976_v32  ;;  %v984_v41 = vsub.f32 %v7148_v22, %v983_v36  ;;  %v494_v42 = vand.u32 4294901760, %v7152_v24  ;;  %s381_s11 = scalar_lea.vmem %s7598_s7, %s5707_s16  ;;  %s6869_s16 = smov [#allocation10]  }
  0x8f   : > { %6344 = vmatpush3.bf16.msra.mxu0 %v7150_v23  ;;  %v501_v43 = vand.u32 4294901760, %v7155_v25  ;;  %v990_v44 = vand.u32 4294901760, %v7168_v34  ;;  %v482_v46 = vand.u32 4294901760, %v481_v38  ;;  %v489_v47 = vand.u32 4294901760, %v488_v39  ;;  %s6782_s25 = sshll.u32 %s6869_s16, 4  ;;  %s6783_s25 = int_to_ptr.vmem [resolvable:$false] %s6782_s25 }
  0x90   : > { %6380 = vmatpush3.bf16.msra.mxu1 %v7166_v33  ;;  %v7194_v45 = vand.u32 4294901760, %v7174_v37  ;;  %6345 = vmatprep.subr.bf16.mxu0 %v6860_v0  ;;  %v978_v48 = vand.u32 4294901760, %v977_v40  ;;  %v985_v49 = vand.u32 4294901760, %v984_v41  ;;  %v495_v50 = vsub.f32 %v7152_v24, %v494_v42  ;;  %s6784_s20 = scalar_lea.vmem %s6783_s25, 256 }
  0x91   : > { %6381 = vmatprep.subr.bf16.mxu1 %v6860_v0  ;;  %v502_v51 = vsub.f32 %v7155_v25, %v501_v43  ;;  %v991_v52 = vsub.f32 %v7168_v34, %v990_v44  ;;  %v997_v54 = vand.u32 4294901760, %v7170_v35  ;;  %v6346_v55 = vpack.c.bf16 %v489_v47, %v482_v46 }
  0x92   : > { %v470_v53 = vsub.f32 %v7174_v37, %v7194_v45  ;;  %v6382_v56 = vpack.c.bf16 %v985_v49, %v978_v48  ;;  %v496_v57 = vand.u32 4294901760, %v495_v50  ;;  %v6352_v3 = vpack.c.bf16 %v7142_v19, %v7140_v18 }
  0x93   : > { %v503_v58 = vand.u32 4294901760, %v502_v51  ;;  %v992_v60 = vand.u32 4294901760, %v991_v52  ;;  %v998_v61 = vsub.f32 %v7170_v35, %v997_v54  ;;  %v6388_v4 = vpack.c.bf16 %v7148_v22, %v7144_v20 }
  0x94   : > { %v7210_v59 = vand.u32 4294901760, %v470_v53  ;;  %v6355_v5 = vpack.c.bf16 %v7155_v25, %v7152_v24  ;;  %v6391_v6 = vpack.c.bf16 %v7170_v35, %v7168_v34  ;;  %v6364_v7 = vpack.c.bf16 %v487_v31, %v480_v30 }
  0x95   : > { %v999_v62 = vand.u32 4294901760, %v998_v61  ;;  %v6349_v63 = vpack.c.bf16 %v503_v58, %v496_v57  ;;  %v6400_v8 = vpack.c.bf16 %v983_v36, %v976_v32  ;;  %v6367_v9 = vpack.c.bf16 %v501_v43, %v494_v42 }
  0x96   : > { %5910 = vmatmul.mubr.f32.vlgmr.msra.gmra.mrb[0].mxu0 %v7210_v59  ;;  %5976 = vmatmul.mubr.f32.vlgmr.msra.gmra.mrb[0].mxu1 %v7210_v59  ;;  %v6403_v10 = vpack.c.bf16 %v997_v54, %v990_v44  ;;  %v1391_v13 = vand.u32 4294901760, %v1379_v11  ;;  %v1394_v14 = vand.u32 4294901760, %v1380_v12  ;;  %v1397_v20 = vand.u32 4294901760, %v1381_v15 }
  0x97   : > { %6347 = vmatpush3.bf16.msra.mxu0 %v6346_v55  ;;  %6383 = vmatpush3.bf16.msra.mxu1 %v6382_v56  ;;  %v6385_v2 = vpack.c.bf16 %v999_v62, %v992_v60  ;;  %vm5563_vm4 = vcmask 130048   ;;  %vm5565_vm5 = vcmask 195584  }
  0x98   : > { %6348 = vmatprep.subr.bf16.mxu0 %v6860_v0  ;;  %6384 = vmatprep.subr.bf16.mxu1 %v6860_v0  ;;  %v1471_v18 = vsub.f32 %v1379_v11, %v1391_v13  ;;  %v1478_v19 = vsub.f32 %v1380_v12, %v1394_v14  ;;  %v1485_v22 = vsub.f32 %v1381_v15, %v1397_v20 }
  0x99   : > { %5920 = vmatprep.mubr.msk.f32.mxu0 %vm6861_vm0, %v6862_v1  ;;  %5986 = vmatprep.mubr.msk.f32.mxu1 %vm6861_vm0, %v6862_v1 }
  0x9a   : > { %v1479_v24 = vand.u32 4294901760, %v1478_v19  ;;  %v1486_v32 = vand.u32 4294901760, %v1485_v22  ;;  %v6424_v41 = vpack.c.bf16 %v1478_v19, %v1471_v18 }
  0x9b   : > { %6350 = vmatpush3.bf16.msra.mxu0 %v6349_v63  ;;  %6386 = vmatpush3.bf16.msra.mxu1 %v6385_v2 }
  0x9c   : > { %6351 = vmatprep.subr.bf16.mxu0 %v6860_v0  ;;  %6387 = vmatprep.subr.bf16.mxu1 %v6860_v0  ;;  %v1480_v28 = vsub.f32 %v1478_v19, %v1479_v24  ;;  %v1487_v35 = vsub.f32 %v1485_v22, %v1486_v32 }
  0x9e   : > { %5921 = vmatmul.mubr.f32.vlgmr.msra.gmra.mrb[0].mxu0 %v7160_v29  ;;  %5987 = vmatmul.mubr.f32.vlgmr.msra.gmra.mrb[0].mxu1 %v7160_v29  ;;  %v1481_v31 = vand.u32 4294901760, %v1480_v28  ;;  %v1488_v38 = vand.u32 4294901760, %v1487_v35 }
  0x9f   : > { %6353 = vmatpush3.bf16.msra.mxu0 %v6352_v3  ;;  %6389 = vmatpush3.bf16.msra.mxu1 %v6388_v4 }
  0xa0   : > { %6354 = vmatprep.subr.bf16.mxu0 %v6860_v0  ;;  %6390 = vmatprep.subr.bf16.mxu1 %v6860_v0 }
  0xa1   : > { %5931 = vmatprep.mubr.msk.f32.mxu0 %vm6861_vm0, %v6862_v1  ;;  %5997 = vmatprep.mubr.msk.f32.mxu1 %vm6861_vm0, %v6862_v1 }
  0xa3   : > { %6356 = vmatpush3.bf16.msra.mxu0 %v6355_v5  ;;  %6392 = vmatpush3.bf16.msra.mxu1 %v6391_v6 }
  0xa4   : > { %6357 = vmatprep.subr.bf16.mxu0 %v6860_v0  ;;  %6393 = vmatprep.subr.bf16.mxu1 %v6860_v0 }
  0xa6   : > { %5932 = vmatmul.mubr.f32.vlgmr.msra.gmra.mrb[0].mxu0 %v7174_v37  ;;  %5998 = vmatmul.mubr.f32.vlgmr.msra.gmra.mrb[0].mxu1 %v7174_v37 }
  0xa7   : > { %6359 = vmatpush3.bf16.msra.mxu0 %v7138_v17  ;;  %6395 = vmatpush3.bf16.msra.mxu1 %v7146_v21 }
  0xa8   : > { %6360 = vmatprep.subr.bf16.mxu0 %v6860_v0  ;;  %6396 = vmatprep.subr.bf16.mxu1 %v6860_v0 }
  0xa9   : > { %5942 = vmatprep.mubr.msk.f32.mxu0 %vm6861_vm0, %v6862_v1  ;;  %6008 = vmatprep.mubr.msk.f32.mxu1 %vm6861_vm0, %v6862_v1 }
  0xab   : > { %6362 = vmatpush3.bf16.msra.mxu0 %v7150_v23  ;;  %6398 = vmatpush3.bf16.msra.mxu1 %v7166_v33 }
  0xac   : > { %6363 = vmatprep.subr.bf16.mxu0 %v6860_v0  ;;  %6399 = vmatprep.subr.bf16.mxu1 %v6860_v0 }
  0xae   : > { %5943 = vmatmul.mubr.f32.vlgmr.msra.gmra.mrb[0].mxu0 %v7194_v45  ;;  %6009 = vmatmul.mubr.f32.vlgmr.msra.gmra.mrb[0].mxu1 %v7194_v45 }
  0xaf   : > { %6365 = vmatpush3.bf16.msra.mxu0 %v6364_v7  ;;  %6401 = vmatpush3.bf16.msra.mxu1 %v6400_v8 }
  0xb0   : > { %6366 = vmatprep.subr.bf16.mxu0 %v6860_v0  ;;  %6402 = vmatprep.subr.bf16.mxu1 %v6860_v0 }
  0xb1   : > { %5953 = vmatprep.mubr.msk.f32.mxu0 %vm6861_vm0, %v6862_v1  ;;  %6019 = vmatprep.mubr.msk.f32.mxu1 %vm6861_vm0, %v6862_v1 }
  0xb3   : > { %6368 = vmatpush3.bf16.msra.mxu0 %v6367_v9  ;;  %6404 = vmatpush3.bf16.msra.mxu1 %v6403_v10 }
  0xb4   : > { %6369 = vmatprep.subr.bf16.mxu0 %v6860_v0  ;;  %6405 = vmatprep.subr.bf16.mxu1 %v6860_v0 }
  0xb6   : > { %5954 = vmatmul.mubr.f32.vlgmr.msra.gmra.mrb[0].mxu0 %v7160_v29  ;;  %6020 = vmatmul.mubr.f32.vlgmr.msra.gmra.mrb[0].mxu1 %v7160_v29 }
  0xb7   : > { %6371 = vmatpush3.bf16.msra.mxu0 %v7138_v17  ;;  %6407 = vmatpush3.bf16.msra.mxu1 %v7146_v21  ;;  %v6412_v17 = vpack.c.bf16 %v1394_v14, %v1391_v13  ;;  %v1400_v21 = vand.u32 4294901760, %v1382_v16 }
  0xb8   : > { %6372 = vmatprep.subr.bf16.mxu0 %v6860_v0  ;;  %6408 = vmatprep.subr.bf16.mxu1 %v6860_v0 }
  0xb9   : > { %5964 = vmatprep.mubr.msk.f32.mxu0 %vm6861_vm0, %v6862_v1  ;;  %6030 = vmatprep.mubr.msk.f32.mxu1 %vm6861_vm0, %v6862_v1  ;;  %v6415_v25 = vpack.c.bf16 %v1400_v21, %v1397_v20  ;;  %v1492_v26 = vsub.f32 %v1382_v16, %v1400_v21 }
  0xbb   : > { %6374 = vmatpush3.bf16.msra.mxu0 %v7150_v23  ;;  %6410 = vmatpush3.bf16.msra.mxu1 %v7166_v33  ;;  %v1472_v23 = vand.u32 4294901760, %v1471_v18  ;;  %v1493_v33 = vand.u32 4294901760, %v1492_v26  ;;  %v6427_v42 = vpack.c.bf16 %v1492_v26, %v1485_v22  ;;  %v5710_v22 = vld [vmem:[%s7597_s6] ss:$0 sm:$0xff] }
  0xbc   : > { %6099 = vmatprep.subr.mxu1 %v6862_v1  ;;  %6411 = vmatprep.subr.bf16.mxu0 %v6860_v0 }
  0xbd   : > { %v1473_v27 = vsub.f32 %v1471_v18, %v1472_v23  ;;  %v1494_v36 = vsub.f32 %v1492_v26, %v1493_v33  ;;  %v6436_v43 = vpack.c.bf16 %v1479_v24, %v1472_v23  ;;  %v6439_v44 = vpack.c.bf16 %v1493_v33, %v1486_v32 }
  0xbe   : > { %5965 = vmatmul.mubr.f32.vlgmr.msra.gmra.mrb[0].mxu0 %v7160_v29  ;;  %6031 = vmatmul.mubr.f32.vlgmr.msra.gmra.mrb[0].mxu1 %v7160_v29 }
  0xbf   : > { %6101 = vmatprep.mubr.msk.f32.mxu1 %vm6861_vm0, %v6862_v1  ;;  %6041 = vmatprep.mubr.msk.f32.mxu0 %vm6861_vm0, %v6862_v1  ;;  %v1474_v30 = vand.u32 4294901760, %v1473_v27  ;;  %v1495_v39 = vand.u32 4294901760, %v1494_v36 }
  0xc0   : > { %6413 = vmatpush3.bf16.msra.mxu0 %v6412_v17 }
  0xc1   : > { %6414 = vmatprep.subr.bf16.mxu0 %v6860_v0  ;;  %v6418_v34 = vpack.c.bf16 %v1481_v31, %v1474_v30  ;;  %v6421_v40 = vpack.c.bf16 %v1495_v39, %v1488_v38 }
  0xc4   : > { %6416 = vmatpush3.bf16.msra.mxu0 %v6415_v25 }
  0xc5   : > { %6417 = vmatprep.subr.bf16.mxu0 %v6860_v0 }
  0xc7   : > { %6042 = vmatmul.mubr.f32.vlgmr.msra.gmra.mrb[2].mxu0 %v7210_v59 }
  0xc8   : > { %6419 = vmatpush3.bf16.msra.mxu0 %v6418_v34  ;;  %6052 = vmatprep.mubr.msk.f32.mxu0 %vm6861_vm0, %v6862_v1 }
  0xc9   : > { %6420 = vmatprep.subr.bf16.mxu0 %v6860_v0 }
  0xcc   : > { %6422 = vmatpush3.bf16.msra.mxu0 %v6421_v40 }
  0xcd   : > { %6423 = vmatprep.subr.bf16.mxu0 %v6860_v0 }
  0xcf   : > { %6053 = vmatmul.mubr.f32.vlgmr.msra.gmra.mrb[2].mxu0 %v7160_v29 }
  0xd0   : > { %6425 = vmatpush3.bf16.msra.mxu0 %v6424_v41  ;;  %6063 = vmatprep.mubr.msk.f32.mxu0 %vm6861_vm0, %v6862_v1 }
  0xd1   : > { %6426 = vmatprep.subr.bf16.mxu0 %v6860_v0 }
  0xd4   : > { %6428 = vmatpush3.bf16.msra.mxu0 %v6427_v42 }
  0xd5   : > { %6429 = vmatprep.subr.bf16.mxu0 %v6860_v0 }
  0xd7   : > { %6064 = vmatmul.mubr.f32.vlgmr.msra.gmra.mrb[2].mxu0 %v7174_v37  ;;  %v5708_v37 = vld [vmem:[%s7593_s2] ss:$0 sm:$0xff] }
  0xd8   : > { %6431 = vmatpush3.bf16.msra.mxu0 %v6412_v17  ;;  %6074 = vmatprep.mubr.msk.f32.mxu0 %vm6861_vm0, %v6862_v1 }
  0xd9   : > { %6432 = vmatprep.subr.bf16.mxu0 %v6860_v0 }
  0xdc   : > { %6434 = vmatpush3.bf16.msra.mxu0 %v6415_v25 }
  0xdd   : > { %6435 = vmatprep.subr.bf16.mxu0 %v6860_v0 }
  0xdf   : > { %6075 = vmatmul.mubr.f32.vlgmr.msra.gmra.mrb[2].mxu0 %v7194_v45  ;;  %v5709_v45 = vld [vmem:[%s7595_s4] ss:$0 sm:$0xff] }
  0xe0   : > { %6437 = vmatpush3.bf16.msra.mxu0 %v6436_v43  ;;  %6085 = vmatprep.mubr.msk.f32.mxu0 %vm6861_vm0, %v6862_v1 }
  0xe1   : > { %6438 = vmatprep.subr.bf16.mxu0 %v6860_v0 }
  0xe4   : > { %6440 = vmatpush3.bf16.msra.mxu0 %v6439_v44 }
  0xe5   : > { %6441 = vmatprep.subr.bf16.mxu0 %v6860_v0 }
  0xe7   : > { %6086 = vmatmul.mubr.f32.vlgmr.msra.gmra.mrb[2].mxu0 %v7160_v29 }
  0xe8   : > { %6443 = vmatpush3.bf16.msra.mxu0 %v6412_v17  ;;  %6096 = vmatprep.mubr.msk.f32.mxu0 %vm6861_vm0, %v6862_v1 }
  0xe9   : > { %6444 = vmatprep.subr.bf16.mxu0 %v6860_v0 }
  0xec   : > { %6446 = vmatpush3.bf16.msra.mxu0 %v6415_v25 }
  0xed   : > { %6159 = vmatprep.subr.mxu0 %v6862_v1 }
  0xef   : > { %6097 = vmatmul.mubr.f32.vlgmr.msra.gmra.mrb[2].mxu0 %v7160_v29 }
  0xf0   : > { %6161 = vmatprep.mubr.msk.f32.mxu0 %vm6861_vm0, %v6862_v1 }
 0x191   : > { %v879_v46 = vpop.f32.mrb[0].mxu0  ;;  %v1375_v47 = vpop.f32.mrb[0].mxu1 }
 0x192   : > { %v6447_v0 = vadd.f32 %v5708_v37, %v879_v46  ;;  %v6448_v48 = vadd.f32 %v5709_v45, %v1375_v47  ;;  %v5966_v49 = vpop.f32.mrb[1].mxu0  ;;  %v6032_v50 = vpop.f32.mrb[1].mxu1 }
 0x194   : > { %v1878_v29 = vsel %vm1876_vm2, %v6447_v0, 0  ;;  %3712 = vrot.lane.b32.xlu1 %v6447_v0, %s6863_s15  ;;  %2792 = vrot.lane.b32.xlu0 %v6447_v0, %s6864_s18  ;;  %v1881_v51 = vsel %vm1876_vm2, %v6448_v48, 0 }
 0x195   : > { %v1949_v52 = vand.u32 4294901760, %v1878_v29  ;;  %v1884_v53 = vand.u32 4294901760, %v1881_v51 }
 0x197   : > { %v1950_v54 = vsub.f32 %v1878_v29, %v1949_v52  ;;  %6100 = vmatpush3.xpose.msra.mxu1 %v1884_v53  ;;  %v1961_v55 = vsub.f32 %v1881_v51, %v1884_v53 }
 0x198   : > { %3714 = vrot.lane.b32.xlu1 %v6448_v48, %s6863_s15  ;;  %2794 = vrot.lane.b32.xlu0 %v6448_v48, %s6864_s18 }
 0x199   : > { %6104 = vmatprep.subr.mxu1 %v6862_v1  ;;  %v1951_v56 = vand.u32 4294901760, %v1950_v54  ;;  %v1962_v57 = vand.u32 4294901760, %v1961_v55 }
 0x19b   : > { %v1952_v58 = vsub.f32 %v1950_v54, %v1951_v56  ;;  %v1963_v59 = vsub.f32 %v1961_v55, %v1962_v57 }
 0x19c   : > { %4633 = vrot.lane.b32.xlu1 %v6448_v48, %s6865_s19  ;;  %4631 = vrot.lane.b32.xlu0 %v6447_v0, %s6865_s19  ;;  %v1875_v0 = vld [vmem:[%s381_s11] sm:$0xff] }
 0x19d   : > { %v1953_v60 = vand.u32 4294901760, %v1952_v58  ;;  %v1964_v61 = vand.u32 4294901760, %v1963_v59  ;;  %vm2330_vm3 = vcmp.gt.f32.partialorder %v1875_v0, 0.0 }
 0x19f   : > { %6102 = vmatmul.mubr.f32.vlgmr.msra.gmra.mrb[2].mxu1 %v1953_v60 }
 0x1a0   : > { %6105 = vmatpush3.xpose.msra.mxu1 %v1964_v61  ;;  %6106 = vmatprep.mubr.msk.f32.mxu1 %vm6861_vm0, %v6862_v1 }
 0x1a1   : > { %6109 = vmatprep.subr.mxu1 %v6862_v1 }
 0x1a7   : > { %6107 = vmatmul.mubr.f32.vlgmr.msra.gmra.mrb[2].mxu1 %v1949_v52 }
 0x1a8   : > { %6110 = vmatpush3.xpose.msra.mxu1 %v1961_v55  ;;  %6111 = vmatprep.mubr.msk.f32.mxu1 %vm6861_vm0, %v6862_v1 }
 0x1a9   : > { %6114 = vmatprep.subr.mxu1 %v6862_v1 }
 0x1af   : > { %6112 = vmatmul.mubr.f32.vlgmr.msra.gmra.mrb[2].mxu1 %v1950_v54 }
 0x1b0   : > { %6115 = vmatpush3.xpose.msra.mxu1 %v1884_v53  ;;  %6116 = vmatprep.mubr.msk.f32.mxu1 %vm6861_vm0, %v6862_v1 }
 0x1b1   : > { %6119 = vmatprep.subr.mxu1 %v6862_v1 }
 0x1b7   : > { %6117 = vmatmul.mubr.f32.vlgmr.msra.gmra.mrb[2].mxu1 %v1951_v56 }
 0x1b8   : > { %6120 = vmatpush3.xpose.msra.mxu1 %v1962_v57  ;;  %6121 = vmatprep.mubr.msk.f32.mxu1 %vm6861_vm0, %v6862_v1 }
 0x1b9   : > { %6124 = vmatprep.subr.mxu1 %v6862_v1 }
 0x1bf   : > { %6122 = vmatmul.mubr.f32.vlgmr.msra.gmra.mrb[2].mxu1 %v1949_v52 }
 0x1c0   : > { %6125 = vmatpush3.xpose.msra.mxu1 %v1884_v53  ;;  %6126 = vmatprep.mubr.msk.f32.mxu1 %vm6861_vm0, %v6862_v1 }
 0x1c1   : > { %6129 = vmatprep.subr.mxu1 %v6862_v1 }
 0x1c2   : > { %v1871_v25 = vpop.f32.mrb[2].mxu0 }
 0x1c3   : > { %v7384_v26 = vadd.f32 %v5710_v22, %v1871_v25  ;;  %v6098_v27 = vpop.f32.mrb[3].mxu0 }
 0x1c5   : > { %v7387_v30 = vand.u32 4294901760, %v7384_v26 }
 0x1c7   : > { %6127 = vmatmul.mubr.f32.vlgmr.msra.gmra.mrb[2].mxu1 %v1949_v52 }
 0x1c8   : > { %6131 = vmatprep.mubr.msk.f32.mxu1 %vm6861_vm0, %v6862_v1  ;;  %6130 = vmatpush3.msra.mxu1 %v7387_v30 }
 0x1c9   : > { %6134 = vmatprep.subr.mxu1 %v6862_v1 }
 0x206   : > { %v2793_v62 = vpop.permute.xlu0 %2792  ;;  %v3713_v14 = vpop.permute.xlu1 %3712 }
 0x207   : > { %v2796_v63 = vsel %vm1876_vm2, %v2793_v62, 0  ;;  %v3716_v16 = vsel %vm1876_vm2, %v3713_v14, 0 }
 0x208   : > { %v2866_v2 = vand.u32 4294901760, %v2796_v63  ;;  %v3786_v18 = vand.u32 4294901760, %v3716_v16 }
 0x20a   : > { %v2867_v3 = vsub.f32 %v2796_v63, %v2866_v2  ;;  %v2795_v4 = vpop.permute.xlu0 %2794  ;;  %v3715_v15 = vpop.permute.xlu1 %3714  ;;  %v3787_v20 = vsub.f32 %v3716_v16, %v3786_v18 }
 0x20b   : > { %v2798_v5 = vsel %vm1876_vm2, %v2795_v4, 0  ;;  %v3718_v17 = vsel %vm1876_vm2, %v3715_v15, 0 }
 0x20c   : > { %v2868_v6 = vand.u32 4294901760, %v2867_v3  ;;  %v2801_v7 = vand.u32 4294901760, %v2798_v5  ;;  %v3721_v19 = vand.u32 4294901760, %v3718_v17  ;;  %v3788_v23 = vand.u32 4294901760, %v3787_v20 }
 0x20e   : > { %v2869_v8 = vsub.f32 %v2867_v3, %v2868_v6  ;;  %v2878_v9 = vsub.f32 %v2798_v5, %v2801_v7  ;;  %6160 = vmatpush3.xpose.msra.mxu0 %v2801_v7  ;;  %v3798_v21 = vsub.f32 %v3718_v17, %v3721_v19  ;;  %v3789_v28 = vsub.f32 %v3787_v20, %v3788_v23  ;;  %v4632_v34 = vpop.permute.xlu0 %4631  ;;  %v4634_v35 = vpop.permute.xlu1 %4633 }
 0x20f   : > { %6164 = vmatprep.subr.mxu0 %v6862_v1  ;;  %v4635_v36 = vsel %vm1876_vm2, %v4632_v34, 0  ;;  %v4637_v38 = vsel %vm1876_vm2, %v4634_v35, 0 }
 0x210   : > { %v2870_v10 = vand.u32 4294901760, %v2869_v8  ;;  %v2879_v11 = vand.u32 4294901760, %v2878_v9  ;;  %v3799_v24 = vand.u32 4294901760, %v3798_v21  ;;  %v3790_v32 = vand.u32 4294901760, %v3789_v28 }
 0x211   : > { %v4705_v39 = vand.u32 4294901760, %v4635_v36  ;;  %v4640_v40 = vand.u32 4294901760, %v4637_v38 }
 0x212   : > { %v2880_v12 = vsub.f32 %v2878_v9, %v2879_v11  ;;  %6162 = vmatmul.mubr.f32.vlgmr.msra.gmra.mrb[4].mxu0 %v2870_v10  ;;  %v3800_v31 = vsub.f32 %v3798_v21, %v3799_v24 }
 0x213   : > { %6166 = vmatprep.mubr.msk.f32.mxu0 %vm6861_vm0, %v6862_v1  ;;  %v4706_v41 = vsub.f32 %v4635_v36, %v4705_v39  ;;  %v4717_v42 = vsub.f32 %v4637_v38, %v4640_v40 }
 0x214   : > { %v2881_v13 = vand.u32 4294901760, %v2880_v12  ;;  %v3801_v33 = vand.u32 4294901760, %v3800_v31 }
 0x215   : > { %v4707_v43 = vand.u32 4294901760, %v4706_v41  ;;  %v4718_v44 = vand.u32 4294901760, %v4717_v42 }
 0x216   : > { %6165 = vmatpush3.xpose.msra.mxu0 %v2881_v13 }
 0x217   : > { %6169 = vmatprep.subr.mxu0 %v6862_v1  ;;  %v4708_v37 = vsub.f32 %v4706_v41, %v4707_v43  ;;  %v4719_v45 = vsub.f32 %v4717_v42, %v4718_v44 }
 0x219   : > { %v4709_v46 = vand.u32 4294901760, %v4708_v37  ;;  %v4720_v47 = vand.u32 4294901760, %v4719_v45 }
 0x21a   : > { %6167 = vmatmul.mubr.f32.vlgmr.msra.gmra.mrb[4].mxu0 %v2866_v2 }
 0x21b   : > { %6170 = vmatpush3.xpose.msra.mxu0 %v2878_v9  ;;  %6171 = vmatprep.mubr.msk.f32.mxu0 %vm6861_vm0, %v6862_v1 }
 0x21c   : > { %6174 = vmatprep.subr.mxu0 %v6862_v1 }
 0x222   : > { %6172 = vmatmul.mubr.f32.vlgmr.msra.gmra.mrb[4].mxu0 %v2867_v3 }
 0x223   : > { %6175 = vmatpush3.xpose.msra.mxu0 %v2801_v7  ;;  %6176 = vmatprep.mubr.msk.f32.mxu0 %vm6861_vm0, %v6862_v1 }
 0x224   : > { %6179 = vmatprep.subr.mxu0 %v6862_v1 }
 0x22a   : > { %6177 = vmatmul.mubr.f32.vlgmr.msra.gmra.mrb[4].mxu0 %v2868_v6 }
 0x22b   : > { %6180 = vmatpush3.xpose.msra.mxu0 %v2879_v11  ;;  %6181 = vmatprep.mubr.msk.f32.mxu0 %vm6861_vm0, %v6862_v1 }
 0x22c   : > { %6184 = vmatprep.subr.mxu0 %v6862_v1 }
 0x232   : > { %6182 = vmatmul.mubr.f32.vlgmr.msra.gmra.mrb[4].mxu0 %v2866_v2 }
 0x233   : > { %6185 = vmatpush3.xpose.msra.mxu0 %v2801_v7  ;;  %6186 = vmatprep.mubr.msk.f32.mxu0 %vm6861_vm0, %v6862_v1 }
 0x234   : > { %6219 = vmatprep.subr.mxu0 %v6862_v1 }
 0x23a   : > { %6187 = vmatmul.mubr.f32.vlgmr.msra.gmra.mrb[4].mxu0 %v2866_v2 }
 0x23b   : > { %6220 = vmatpush3.xpose.msra.mxu0 %v3721_v19  ;;  %6221 = vmatprep.mubr.msk.f32.mxu0 %vm6861_vm0, %v6862_v1 }
 0x23c   : > { %6224 = vmatprep.subr.mxu0 %v6862_v1 }
 0x23e   : > { %6222 = vmatmul.mubr.f32.vlgmr.msra.gmra.mrb[6].mxu0 %v3790_v32 }
 0x23f   : > { %6225 = vmatpush3.xpose.msra.mxu0 %v3801_v33  ;;  %6226 = vmatprep.mubr.msk.f32.mxu0 %vm6861_vm0, %v6862_v1 }
 0x240   : > { %6229 = vmatprep.subr.mxu0 %v6862_v1 }
 0x246   : > { %6227 = vmatmul.mubr.f32.vlgmr.msra.gmra.mrb[6].mxu0 %v3786_v18 }
 0x247   : > { %6230 = vmatpush3.xpose.msra.mxu0 %v3798_v21  ;;  %6231 = vmatprep.mubr.msk.f32.mxu0 %vm6861_vm0, %v6862_v1  ;;  %v2424_v21 = vsub.f32 %v7384_v26, %v7387_v30 }
 0x248   : > { %6234 = vmatprep.subr.mxu0 %v6862_v1 }
 0x24e   : > { %6232 = vmatmul.mubr.f32.vlgmr.msra.gmra.mrb[6].mxu0 %v3787_v20 }
 0x24f   : > { %6235 = vmatpush3.xpose.msra.mxu0 %v3721_v19  ;;  %6236 = vmatprep.mubr.msk.f32.mxu0 %vm6861_vm0, %v6862_v1 }
 0x250   : > { %6239 = vmatprep.subr.mxu0 %v6862_v1 }
 0x256   : > { %6237 = vmatmul.mubr.f32.vlgmr.msra.gmra.mrb[6].mxu0 %v3788_v23 }
 0x257   : > { %6240 = vmatpush3.xpose.msra.mxu0 %v3799_v24  ;;  %6241 = vmatprep.mubr.msk.f32.mxu0 %vm6861_vm0, %v6862_v1  ;;  %v2425_v24 = vand.u32 4294901760, %v2424_v21 }
 0x258   : > { %6244 = vmatprep.subr.mxu0 %v6862_v1 }
 0x259   : > { %v2426_v32 = vsub.f32 %v2424_v21, %v2425_v24 }
 0x25b   : > { %v2427_v35 = vand.u32 4294901760, %v2426_v32 }
 0x25e   : > { %6242 = vmatmul.mubr.f32.vlgmr.msra.gmra.mrb[6].mxu0 %v3786_v18 }
 0x25f   : > { %6245 = vmatpush3.xpose.msra.mxu0 %v3721_v19  ;;  %6246 = vmatprep.mubr.msk.f32.mxu0 %vm6861_vm0, %v6862_v1 }
 0x260   : > { %6279 = vmatprep.subr.mxu0 %v6862_v1 }
 0x266   : > { %6247 = vmatmul.mubr.f32.vlgmr.msra.gmra.mrb[6].mxu0 %v3786_v18 }
 0x267   : > { %6280 = vmatpush3.xpose.msra.mxu0 %v4640_v40  ;;  %6281 = vmatprep.mubr.msk.f32.mxu0 %vm6861_vm0, %v6862_v1 }
 0x268   : > { %6284 = vmatprep.subr.mxu0 %v6862_v1 }
 0x26a   : > { %6282 = vmatmul.mubr.f32.vlgmr.msra.gmra.mrb[8].mxu0 %v4709_v46 }
 0x26b   : > { %6285 = vmatpush3.xpose.msra.mxu0 %v4720_v47  ;;  %6286 = vmatprep.mubr.msk.f32.mxu0 %vm6861_vm0, %v6862_v1 }
 0x26c   : > { %6289 = vmatprep.subr.mxu0 %v6862_v1 }
 0x272   : > { %6287 = vmatmul.mubr.f32.vlgmr.msra.gmra.mrb[8].mxu0 %v4705_v39 }
 0x273   : > { %6290 = vmatpush3.xpose.msra.mxu0 %v4717_v42  ;;  %6291 = vmatprep.mubr.msk.f32.mxu0 %vm6861_vm0, %v6862_v1 }
 0x274   : > { %6294 = vmatprep.subr.mxu0 %v6862_v1 }
 0x27a   : > { %6292 = vmatmul.mubr.f32.vlgmr.msra.gmra.mrb[8].mxu0 %v4706_v41 }
 0x27b   : > { %6295 = vmatpush3.xpose.msra.mxu0 %v4640_v40  ;;  %6296 = vmatprep.mubr.msk.f32.mxu0 %vm6861_vm0, %v6862_v1 }
 0x27c   : > { %6299 = vmatprep.subr.mxu0 %v6862_v1 }
 0x282   : > { %6297 = vmatmul.mubr.f32.vlgmr.msra.gmra.mrb[8].mxu0 %v4707_v43 }
 0x283   : > { %6300 = vmatpush3.xpose.msra.mxu0 %v4718_v44  ;;  %6301 = vmatprep.mubr.msk.f32.mxu0 %vm6861_vm0, %v6862_v1 }
 0x284   : > { %6304 = vmatprep.subr.mxu0 %v6862_v1 }
 0x28a   : > { %6302 = vmatmul.mubr.f32.vlgmr.msra.gmra.mrb[8].mxu0 %v4705_v39 }
 0x28b   : > { %6305 = vmatpush3.xpose.msra.mxu0 %v4640_v40  ;;  %6306 = vmatprep.mubr.msk.f32.mxu0 %vm6861_vm0, %v6862_v1 }
 0x292   : > { %6307 = vmatmul.mubr.f32.vlgmr.msra.gmra.mrb[8].mxu0 %v4705_v39 }
 0x29a   : > { %v2325_v48 = vpop.f32.mrb[2].mxu1 }
 0x29b   : > { %v2329_v49 = vmul.f32 0.35355338, %v2325_v48  ;;  %v6128_v50 = vpop.f32.mrb[3].mxu1 }
 0x29d   : > { %v2331_v29 = vsel %vm2330_vm3, -1e+08, %v2329_v49 }
 0x29e   : > { %v2332_v51 = vsel %vm1876_vm2, %v2331_v29, -inf }
 0x29f   : > { %2333 = vmax.xlane.f32.xlu0 %v2332_v51 }
 0x30d   : > { %v3242_v52 = vpop.f32.mrb[4].mxu0 }
 0x30e   : > { %v3246_v53 = vmul.f32 0.35355338, %v3242_v52  ;;  %v6188_v54 = vpop.f32.mrb[5].mxu0 }
 0x310   : > { %v3247_v55 = vsel %vm2330_vm3, -1e+08, %v3246_v53 }
 0x311   : > { %v3248_v56 = vsel %vm1876_vm2, %v3247_v55, -inf }
 0x312   : > { %3249 = vmax.xlane.f32.xlu1 %v3248_v56 }
 0x32c   : > { %v2334_v57 = vpop.xlane.xlu0 %2333 }
 0x32d   : > { %v2335_v58 = vsub.f32 %v2331_v29, %v2334_v57 }
 0x32f   : > { %v2336_v59 = vmul.f32 1.442695, %v2335_v58 }
 0x331   : > { %6648 = vpow2.f32 %v2336_v59 }
 0x339   : > { %v4162_v60 = vpop.f32.mrb[6].mxu0 }
 0x33a   : > { %v4166_v61 = vmul.f32 0.35355338, %v4162_v60  ;;  %v6248_v62 = vpop.f32.mrb[7].mxu0 }
 0x33b   : > { %v6649_v63 = vpop.eup %6648 }
 0x33c   : > { %v2338_v2 = vsel %vm1876_vm2, %v6649_v63, 0.0  ;;  %v4167_v3 = vsel %vm2330_vm3, -1e+08, %v4166_v61 }
 0x33d   : > { %2339 = vadd.xlane.f32.xlu0 %v2338_v2  ;;  %v4168_v4 = vsel %vm1876_vm2, %v4167_v3, -inf }
 0x341   : > { %4169 = vmax.xlane.f32.xlu0 %v4168_v4 }
 0x365   : > { %v5081_v5 = vpop.f32.mrb[8].mxu0 }
 0x366   : > { %v5085_v6 = vmul.f32 0.35355338, %v5081_v5  ;;  %v6308_v7 = vpop.f32.mrb[9].mxu0 }
 0x368   : > { %v5086_v8 = vsel %vm2330_vm3, -1e+08, %v5085_v6 }
 0x369   : > { %v5087_v9 = vsel %vm1876_vm2, %v5086_v8, -inf }
 0x36a   : > { %5088 = vmax.xlane.f32.xlu0 %v5087_v9 }
 0x39f   : > { %v3250_v10 = vpop.xlane.xlu1 %3249 }
 0x3a0   : > { %v3251_v11 = vsub.f32 %v3247_v55, %v3250_v10 }
 0x3a2   : > { %v3252_v12 = vmul.f32 1.442695, %v3251_v11 }
 0x3a4   : > { %6650 = vpow2.f32 %v3252_v12 }
 0x3ae   : > { %v7442_v13 = vpop.eup %6650 }
 0x3af   : > { %v3254_v14 = vsel %vm1876_vm2, %v7442_v13, 0.0 }
 0x3b0   : > { %3255 = vadd.xlane.f32.xlu1 %v3254_v14 }
 0x3c1   : > { %3260 = vrot.lane.b32.xlu1 %v7384_v26, %s6864_s18  ;;  %s377_s18 = scalar_lea.vmem [#allocation10], %s5702_s12 }
 0x3ca   : > { %v2340_v15 = vpop.xlane.xlu0 %2339 }
 0x3cb   : > { %6652 = vrcp.f32 %v2340_v15 }
 0x3ce   : > { %v4170_v16 = vpop.xlane.xlu0 %4169 }
 0x3cf   : > { %v4171_v17 = vsub.f32 %v4167_v3, %v4170_v16 }
 0x3d1   : > { %v4172_v18 = vmul.f32 1.442695, %v4171_v17 }
 0x3d3   : > { %6654 = vpow2.f32 %v4172_v18 }
 0x3d5   : > { %v6653_v19 = vpop.eup %6652 }
 0x3d6   : > { %v2342_v20 = vmul.f32 %v6653_v19, %v6649_v63 }
 0x3d8   : > { %v2344_v22 = vsel %vm1876_vm2, %v2342_v20, 0 }
 0x3d9   : > { %v2412_v23 = vand.u32 4294901760, %v2344_v22 }
 0x3db   : > { %v2413_v25 = vsub.f32 %v2344_v22, %v2412_v23 }
 0x3dd   : > { %v7451_v27 = vpop.eup %6654  ;;  %v2414_v28 = vand.u32 4294901760, %v2413_v25 }
 0x3de   : > { %v4174_v31 = vsel %vm1876_vm2, %v7451_v27, 0.0 }
 0x3df   : > { %4175 = vadd.xlane.f32.xlu0 %v4174_v31  ;;  %v2415_v33 = vsub.f32 %v2413_v25, %v2414_v28 }
 0x3e1   : > { %v2416_v34 = vand.u32 4294901760, %v2415_v33 }
 0x3e3   : > { %6132 = vmatmul.mubr.f32.vlgmr.msra.gmra.mrb[4].mxu1 %v2416_v34 }
 0x3e4   : > { %6135 = vmatpush3.msra.mxu1 %v2427_v35  ;;  %6136 = vmatprep.mubr.msk.f32.mxu1 %vm6861_vm0, %v6862_v1 }
 0x3e5   : > { %6139 = vmatprep.subr.mxu1 %v6862_v1 }
 0x3eb   : > { %6137 = vmatmul.mubr.f32.vlgmr.msra.gmra.mrb[4].mxu1 %v2412_v23 }
 0x3ec   : > { %6140 = vmatpush3.msra.mxu1 %v2424_v21  ;;  %6141 = vmatprep.mubr.msk.f32.mxu1 %vm6861_vm0, %v6862_v1 }
 0x3ed   : > { %6144 = vmatprep.subr.mxu1 %v6862_v1 }
 0x3f3   : > { %6142 = vmatmul.mubr.f32.vlgmr.msra.gmra.mrb[4].mxu1 %v2413_v25 }
 0x3f4   : > { %6145 = vmatpush3.msra.mxu1 %v7387_v30  ;;  %6146 = vmatprep.mubr.msk.f32.mxu1 %vm6861_vm0, %v6862_v1 }
 0x3f5   : > { %4179 = vrot.lane.b32.xlu0 %v7384_v26, %s6863_s15  ;;  %6149 = vmatprep.subr.mxu1 %v6862_v1  ;;  %s5712_s15 = sshll.u32 %s6936_s9, 7  ;;  %s5569_s9 = scalar_lea.sflag [#allocation4], %s7114_s27 }
 0x3f6   : > { %s7546_s14 = scalar_lea.hbm %s7599_s8, %s5712_s15 }
 0x3f7   : > { %v5089_v36 = vpop.xlane.xlu0 %5088 }
 0x3f8   : > { %v5090_v38 = vsub.f32 %v5086_v8, %v5089_v36 }
 0x3f9   : > { %5098 = vrot.lane.b32.xlu0 %v7384_v26, %s6865_s19  ;;  %s5582_s19 = sshll.u32 %s377_s18, 4  ;;  %s7548_s19 = int_to_ptr.vmem [resolvable:$true] %s5582_s19 }
 0x3fa   : > { %v5091_v39 = vmul.f32 1.442695, %v5090_v38  ;;  %s6778_s12 = scalar_lea.vmem %s7548_s19, 128  ;;  %p6785_p1 = scmp.lt.s32.totalorder %s7548_s19, %s6783_s25 }
 0x3fb   : > { %6147 = vmatmul.mubr.f32.vlgmr.msra.gmra.mrb[4].mxu1 %v2414_v28  ;;  %p6779_p3 = scmp.ne.s32.totalorder %s7548_s19, %s6778_s12  ;;  %p6786_p2 = scmp.lt.s32.totalorder %s6784_s20, %s6778_s12 }
 0x3fc   : > { %6656 = vpow2.f32 %v5091_v39  ;;  %6150 = vmatpush3.msra.mxu1 %v2425_v24  ;;  %6151 = vmatprep.mubr.msk.f32.mxu1 %vm6861_vm0, %v6862_v1 }
 0x3fd   : > { %6154 = vmatprep.subr.mxu1 %v6862_v1  ;;  %p6780_p7 = pnand %p6779_p3, %p7069_p5  ;;  %p6787_p4 = por %p6786_p2, %p6785_p1 }
 0x3ff   : > { %p6781_p12 = pneg %p6780_p7 }
 0x401   : > { %p6788_p0 = pnand %p6787_p4, %p6781_p12 }
 0x403   : > { %6152 = vmatmul.mubr.f32.vlgmr.msra.gmra.mrb[4].mxu1 %v2412_v23 }
 0x404   : > { %6155 = vmatpush3.msra.mxu1 %v7387_v30  ;;  %6156 = vmatprep.mubr.msk.f32.mxu1 %vm6861_vm0, %v6862_v1 }
 0x405   : > { %6189 = vmatprep.subr.mxu1 %v6862_v1 }
 0x406   : > { %v7476_v40 = vpop.eup %6656 }
 0x407   : > { %v5093_v26 = vsel %vm1876_vm2, %v7476_v40, 0.0 }
 0x408   : > { %5094 = vadd.xlane.f32.xlu1 %v5093_v26 }
 0x40b   : > { %6157 = vmatmul.mubr.f32.vlgmr.msra.gmra.mrb[4].mxu1 %v2412_v23 }
 0x40c   : > { %6191 = vmatprep.mubr.msk.f32.mxu1 %vm6861_vm0, %v6862_v1 }
 0x43d   : > { %v3256_v41 = vpop.xlane.xlu1 %3255 }
 0x43e   : > { %6658 = vrcp.f32 %v3256_v41 }
 0x441   : > { %v3261_v42 = vpop.permute.xlu1 %3260 }
 0x442   : > { %v3267_v43 = vand.u32 4294901760, %v3261_v42 }
 0x444   : > { %6190 = vmatpush3.msra.mxu1 %v3267_v43  ;;  %v3344_v37 = vsub.f32 %v3261_v42, %v3267_v43 }
 0x445   : > { %6194 = vmatprep.subr.mxu1 %v6862_v1 }
 0x446   : > { %v3345_v47 = vand.u32 4294901760, %v3344_v37 }
 0x448   : > { %v6659_v30 = vpop.eup %6658  ;;  %v3346_v49 = vsub.f32 %v3344_v37, %v3345_v47 }
 0x449   : > { %v3258_v44 = vmul.f32 %v6659_v30, %v7442_v13 }
 0x44a   : > { %v3347_v51 = vand.u32 4294901760, %v3346_v49 }
 0x44b   : > { %v3264_v45 = vsel %vm1876_vm2, %v3258_v44, 0 }
 0x44c   : > { %v3332_v46 = vand.u32 4294901760, %v3264_v45 }
 0x44e   : > { %v3333_v0 = vsub.f32 %v3264_v45, %v3332_v46 }
 0x450   : > { %v3334_v48 = vand.u32 4294901760, %v3333_v0 }
 0x452   : > { %v3335_v50 = vsub.f32 %v3333_v0, %v3334_v48 }
 0x454   : > { %v3336_v29 = vand.u32 4294901760, %v3335_v50 }
 0x456   : > { %6192 = vmatmul.mubr.f32.vlgmr.msra.gmra.mrb[6].mxu1 %v3336_v29 }
 0x457   : > { %6195 = vmatpush3.msra.mxu1 %v3347_v51  ;;  %6196 = vmatprep.mubr.msk.f32.mxu1 %vm6861_vm0, %v6862_v1 }
 0x458   : > { %6199 = vmatprep.subr.mxu1 %v6862_v1 }
 0x45e   : > { %6197 = vmatmul.mubr.f32.vlgmr.msra.gmra.mrb[6].mxu1 %v3332_v46 }
 0x45f   : > { %6200 = vmatpush3.msra.mxu1 %v3344_v37  ;;  %6201 = vmatprep.mubr.msk.f32.mxu1 %vm6861_vm0, %v6862_v1 }
 0x460   : > { %6204 = vmatprep.subr.mxu1 %v6862_v1 }
 0x466   : > { %6202 = vmatmul.mubr.f32.vlgmr.msra.gmra.mrb[6].mxu1 %v3333_v0 }
 0x467   : > { %6205 = vmatpush3.msra.mxu1 %v3267_v43  ;;  %6206 = vmatprep.mubr.msk.f32.mxu1 %vm6861_vm0, %v6862_v1 }
 0x468   : > { %6209 = vmatprep.subr.mxu1 %v6862_v1 }
 0x46c   : > { %v4176_v52 = vpop.xlane.xlu0 %4175 }
 0x46d   : > { %6660 = vrcp.f32 %v4176_v52 }
 0x46e   : > { %6207 = vmatmul.mubr.f32.vlgmr.msra.gmra.mrb[6].mxu1 %v3334_v48 }
 0x46f   : > { %6210 = vmatpush3.msra.mxu1 %v3345_v47  ;;  %6211 = vmatprep.mubr.msk.f32.mxu1 %vm6861_vm0, %v6862_v1 }
 0x470   : > { %6214 = vmatprep.subr.mxu1 %v6862_v1  ;;  %v4180_v53 = vpop.permute.xlu0 %4179 }
 0x471   : > { %v4186_v54 = vand.u32 4294901760, %v4180_v53 }
 0x473   : > { %v4263_v57 = vsub.f32 %v4180_v53, %v4186_v54 }
 0x474   : > { %v5099_v6 = vpop.permute.xlu0 %5098 }
 0x475   : > { %v4264_v60 = vand.u32 4294901760, %v4263_v57  ;;  %v5105_v8 = vand.u32 4294901760, %v5099_v6 }
 0x476   : > { %6212 = vmatmul.mubr.f32.vlgmr.msra.gmra.mrb[6].mxu1 %v3332_v46 }
 0x477   : > { %v6661_v55 = vpop.eup %6660  ;;  %6215 = vmatpush3.msra.mxu1 %v3267_v43  ;;  %6216 = vmatprep.mubr.msk.f32.mxu1 %vm6861_vm0, %v6862_v1  ;;  %v4265_v63 = vsub.f32 %v4263_v57, %v4264_v60  ;;  %v5182_v11 = vsub.f32 %v5099_v6, %v5105_v8 }
 0x478   : > { %v4178_v56 = vmul.f32 %v6661_v55, %v7451_v27  ;;  %6249 = vmatprep.subr.mxu1 %v6862_v1 }
 0x479   : > { %v4266_v4 = vand.u32 4294901760, %v4265_v63  ;;  %v5183_v14 = vand.u32 4294901760, %v5182_v11 }
 0x47a   : > { %v4183_v58 = vsel %vm1876_vm2, %v4178_v56, 0 }
 0x47b   : > { %v4251_v59 = vand.u32 4294901760, %v4183_v58  ;;  %v5184_v17 = vsub.f32 %v5182_v11, %v5183_v14 }
 0x47d   : > { %v4252_v61 = vsub.f32 %v4183_v58, %v4251_v59  ;;  %v5185_v19 = vand.u32 4294901760, %v5184_v17 }
 0x47e   : > { %6217 = vmatmul.mubr.f32.vlgmr.msra.gmra.mrb[6].mxu1 %v3332_v46 }
 0x47f   : > { %6250 = vmatpush3.msra.mxu1 %v4186_v54  ;;  %6251 = vmatprep.mubr.msk.f32.mxu1 %vm6861_vm0, %v6862_v1  ;;  %v4253_v62 = vand.u32 4294901760, %v4252_v61 }
 0x480   : > { %6254 = vmatprep.subr.mxu1 %v6862_v1 }
 0x481   : > { %v4254_v2 = vsub.f32 %v4252_v61, %v4253_v62 }
 0x483   : > { %v4255_v3 = vand.u32 4294901760, %v4254_v2 }
 0x485   : > { %6252 = vmatmul.mubr.f32.vlgmr.msra.gmra.mrb[8].mxu1 %v4255_v3 }
 0x486   : > { %6255 = vmatpush3.msra.mxu1 %v4266_v4  ;;  %6256 = vmatprep.mubr.msk.f32.mxu1 %vm6861_vm0, %v6862_v1 }
 0x487   : > { %6259 = vmatprep.subr.mxu1 %v6862_v1 }
 0x48d   : > { %6257 = vmatmul.mubr.f32.vlgmr.msra.gmra.mrb[8].mxu1 %v4251_v59 }
 0x48e   : > { %6260 = vmatpush3.msra.mxu1 %v4263_v57  ;;  %6261 = vmatprep.mubr.msk.f32.mxu1 %vm6861_vm0, %v6862_v1 }
 0x48f   : > { %6264 = vmatprep.subr.mxu1 %v6862_v1 }
 0x495   : > { %v5095_v5 = vpop.xlane.xlu1 %5094  ;;  %6262 = vmatmul.mubr.f32.vlgmr.msra.gmra.mrb[8].mxu1 %v4252_v61 }
 0x496   : > { %6662 = vrcp.f32 %v5095_v5  ;;  %6265 = vmatpush3.msra.mxu1 %v4186_v54  ;;  %6266 = vmatprep.mubr.msk.f32.mxu1 %vm6861_vm0, %v6862_v1 }
 0x497   : > { %6269 = vmatprep.subr.mxu1 %v6862_v1 }
 0x49d   : > { %6267 = vmatmul.mubr.f32.vlgmr.msra.gmra.mrb[8].mxu1 %v4253_v62 }
 0x49e   : > { %6270 = vmatpush3.msra.mxu1 %v4264_v60  ;;  %6271 = vmatprep.mubr.msk.f32.mxu1 %vm6861_vm0, %v6862_v1 }
 0x49f   : > { %6274 = vmatprep.subr.mxu1 %v6862_v1 }
 0x4a0   : > { %v6663_v7 = vpop.eup %6662 }
 0x4a1   : > { %v5097_v9 = vmul.f32 %v6663_v7, %v7476_v40 }
 0x4a3   : > { %v5102_v10 = vsel %vm1876_vm2, %v5097_v9, 0 }
 0x4a4   : > { %v5170_v12 = vand.u32 4294901760, %v5102_v10 }
 0x4a5   : > { %6272 = vmatmul.mubr.f32.vlgmr.msra.gmra.mrb[8].mxu1 %v4251_v59 }
 0x4a6   : > { %6275 = vmatpush3.msra.mxu1 %v4186_v54  ;;  %6276 = vmatprep.mubr.msk.f32.mxu1 %vm6861_vm0, %v6862_v1  ;;  %v5171_v13 = vsub.f32 %v5102_v10, %v5170_v12 }
 0x4a7   : > { %6309 = vmatprep.subr.mxu1 %v6862_v1 }
 0x4a8   : > { %v5172_v15 = vand.u32 4294901760, %v5171_v13 }
 0x4aa   : > { %v5173_v16 = vsub.f32 %v5171_v13, %v5172_v15 }
 0x4ac   : > { %v5174_v18 = vand.u32 4294901760, %v5173_v16 }
 0x4ad   : > { %6277 = vmatmul.mubr.f32.vlgmr.msra.gmra.mrb[8].mxu1 %v4251_v59 }
 0x4ae   : > { %6310 = vmatpush3.msra.mxu1 %v5105_v8  ;;  %6311 = vmatprep.mubr.msk.f32.mxu1 %vm6861_vm0, %v6862_v1 }
 0x4af   : > { %6314 = vmatprep.subr.mxu1 %v6862_v1 }
 0x4b1   : > { %6312 = vmatmul.mubr.f32.vlgmr.msra.gmra.mrb[10].mxu1 %v5174_v18 }
 0x4b2   : > { %6315 = vmatpush3.msra.mxu1 %v5185_v19  ;;  %6316 = vmatprep.mubr.msk.f32.mxu1 %vm6861_vm0, %v6862_v1 }
 0x4b3   : > { %6319 = vmatprep.subr.mxu1 %v6862_v1 }
 0x4b9   : > { %6317 = vmatmul.mubr.f32.vlgmr.msra.gmra.mrb[10].mxu1 %v5170_v12 }
 0x4ba   : > { %6320 = vmatpush3.msra.mxu1 %v5182_v11  ;;  %6321 = vmatprep.mubr.msk.f32.mxu1 %vm6861_vm0, %v6862_v1 }
 0x4bb   : > { %6324 = vmatprep.subr.mxu1 %v6862_v1 }
 0x4c1   : > { %6322 = vmatmul.mubr.f32.vlgmr.msra.gmra.mrb[10].mxu1 %v5171_v13 }
 0x4c2   : > { %6325 = vmatpush3.msra.mxu1 %v5105_v8  ;;  %6326 = vmatprep.mubr.msk.f32.mxu1 %vm6861_vm0, %v6862_v1 }
 0x4c3   : > { %6329 = vmatprep.subr.mxu1 %v6862_v1 }
 0x4c9   : > { %6327 = vmatmul.mubr.f32.vlgmr.msra.gmra.mrb[10].mxu1 %v5172_v15 }
 0x4ca   : > { %6330 = vmatpush3.msra.mxu1 %v5183_v14  ;;  %6331 = vmatprep.mubr.msk.f32.mxu1 %vm6861_vm0, %v6862_v1 }
 0x4cb   : > { %6334 = vmatprep.subr.mxu1 %v6862_v1 }
 0x4d1   : > { %6332 = vmatmul.mubr.f32.vlgmr.msra.gmra.mrb[10].mxu1 %v5170_v12 }
 0x4d2   : > { %6335 = vmatpush3.msra.mxu1 %v5105_v8  ;;  %6336 = vmatprep.mubr.msk.f32.mxu1 %vm6861_vm0, %v6862_v1 }
 0x4d9   : > { %6337 = vmatmul.mubr.f32.vlgmr.msra.gmra.mrb[10].mxu1 %v5170_v12 }
 0x4de   : > { %v2788_v20 = vpop.f32.mrb[4].mxu1 }
 0x4df   : > { %v6158_v21 = vpop.f32.mrb[5].mxu1 }
 0x551   : > { %v3708_v22 = vpop.f32.mrb[6].mxu1 }
 0x552   : > { %v6218_v23 = vpop.f32.mrb[7].mxu1  ;;  %5551 = vrot.lane.b32.xlu0 %v3708_v22, %s6866_s13 }
 0x580   : > { %v4627_v24 = vpop.f32.mrb[8].mxu1 }
 0x581   : > { %5555 = vrot.lane.b32.xlu0 %v4627_v24, %s6867_s10  ;;  %v6278_v25 = vpop.f32.mrb[9].mxu1 }
 0x5ac   : > { %v5546_v27 = vpop.f32.mrb[10].mxu1 }
 0x5ad   : > { %5559 = vrot.lane.b32.xlu0 %v5546_v27, %s6868_s17  ;;  %v6338_v28 = vpop.f32.mrb[11].mxu1 }
 0x5c4   : > { %v5552_v31 = vpop.permute.xlu0 %5551 }
 0x5c5   : > { %v5562_v32 = vsel %vm1876_vm2, %v2788_v20, %v5552_v31 }
 0x5f3   : > { %v5556_v1 = vpop.permute.xlu0 %5555 }
 0x5f4   : > { %v5564_v33 = vsel %vm5563_vm4, %v5562_v32, %v5556_v1 }
 0x61f   : > { %v5560_v34 = vpop.permute.xlu0 %5559 }
 0x620   : > { %v5566_v35 = vsel %vm5565_vm5, %v5564_v33, %v5560_v34 }
 0x621   : > { %5567 = vst.msk [vmem:[%s377_s18] sm:$0xff] %vm394_vm1, %v5566_v35 }
 0x622   : > { %6791 = shalt.err (!%p6788_p0)
}
 0x623   : > { %s6792_s27 = scalar_lea.hbm %s7546_s14, 128  ;;  %s6796_s10 = scalar_lea.hbm %s7599_s8, 256 }
 0x624   : > { %p6793_p9 = scmp.ne.s32.totalorder %s7546_s14, %s6792_s27  ;;  %p6797_p13 = scmp.lt.u32.totalorder %s7546_s14, %s7599_s8 }
 0x625   : > { %p6798_p6 = scmp.lt.u32.totalorder %s6796_s10, %s6792_s27  ;;  %p6800_p3 = scmp.lt.u32.totalorder %s6792_s27, %s7546_s14 }
 0x626   : > { %p6794_p11 = pnand %p6793_p9, %p7069_p5 }
 0x627   : > { %p6799_p10 = por %p6798_p6, %p6797_p13 }
 0x628   : > { %p6795_p8 = pneg %p6794_p11 }
 0x629   : > { %p6801_p7 = por %p6800_p3, %p6799_p10 }
 0x62b   : > { %p6802_p12 = pnand %p6801_p7, %p6795_p8 }
 0x62d   : > { %6805 = shalt.err (!%p6802_p12)
}
 0x62e   : > { %6574 = dma.vmem_to_hbm [thread:$0]  (%p7069_p5), %s7548_s19, 128, %s7546_s14, %s5569_s9  }
 0x62f PF: > { %s7621_s18 = sld [smem:[#allocation15_spill]]  ;;  %s7622_s24 = sld [smem:[#allocation16_spill]] }
 0x630   : > { %p7624_p2 = scmp.ge.s32.totalorder %s6852_s30, 2 }
 0x635   : > { %s5594_s21 = sand.u32 1, %s7621_s18   ;;  %p7623_p1 = scmp.ne.s32.totalorder %s7622_s24, 0 }
 0x636   : > { %s5595_s12 = scalar_lea.sflag [#allocation4], %s5594_s21 }
 0x637   : > { %p6591_p4 = pnand %p7624_p2, %p7623_p1 }
 0x639   : > { %6835 = dma.done.wait (!%p6591_p4), %s5595_s12, 128  }
 0x63a   : > { %6837 = vsyncadd (!%p6591_p4), %s5595_s12, 4294967168  ;;  %p23_p0 = scmp.ge.s32.totalorder %s7055_s26, 4   ;;  %s7625_s27 = smov %s6844_s28 }
 0x63b   : > { %s7626_s28 = smov %s6848_s29  ;;  %s7627_s29 = smov %s7065_s22 }
 0x63c   : > { %s7628_s30 = smov %s7055_s26  ;;  %25 = sbr.rel (!%p23_p0) target bundleno = 7 (0x7), region = 112 }
 0x643   :  { %5600 = vsyncpa [#allocation3], 1 }
 0x644   :  { %5602 = vsyncpa [#allocation3 + $0x1], 1 }
 0x645   :  { %5603 = vsyncpa [#allocation6], 1 }
 0x646   :  { %5604 = vsyncpa [#allocation9], 1 }
 0x647   :  { %5605 = vsyncpa [#allocation4], 1 }
 0x648   :  { %5607 = vsyncpa [#allocation4 + $0x1], 1 }

</bundles_post_ra>
